<compile_context>
chip_gen: v5e
topology: v5e:2x2
jax: 0.10.0
libtpu: 0.0.40
codegen_flags: <defaults>
</compile_context>

<pallas_src>
import jax
import jax.numpy as jnp
from jax.experimental import pallas as pl
from jax.experimental.pallas import tpu as pltpu

NDF = 8          # cfg.GAN.DF_DIM (small synthetic value)
NEF = 32         # cfg.TEXT.EMBEDDING_DIM (unused by forward, kept for fidelity)
LEAK = 0.2
KSIZE = 4        # conv kernel size
STRIDE = 2
PAD = 1


# ------------------------------ Pallas kernel ------------------------------ #
def _fused_dnet64_kernel(x_ref, *refs):
    """Whole img_code_s16 forward: 4 x (conv4x4/s2/p1 + bias + LeakyReLU(0.2)).

    x_ref : (B*H0, W0*C0) f32 activations; rows = (b, h), lanes = (w, c).
    Per layer: m_ref (4, W*Cin, Wo*Cout) bf16  banded weight matrices (one per kh),
               s_ref (4, B*Ho,  B*H)     f32   0/1 row-selection matrices (one per kh),
               b_ref (1, Wo*Cout)        f32   per-lane bias.
    out_ref: (B*H4, W4*C4) f32.
    """
    out_ref = refs[-1]
    layer_refs = refs[:-1]
    n_layers = len(layer_refs) // 3

    h = x_ref[...]                                           # f32 (B*H, W*C)
    for l in range(n_layers):
        m_ref = layer_refs[3 * l + 0]
        s_ref = layer_refs[3 * l + 1]
        b_ref = layer_refs[3 * l + 2]
        rows_out = s_ref.shape[1]
        lanes_out = m_ref.shape[2]
        acc = jnp.zeros((rows_out, lanes_out), dtype=jnp.float32)
        for kh in range(KSIZE):
            # Select input rows h_in = 2*ho + kh - 1 (out-of-range rows -> zeros = padding).
            rows = jnp.dot(s_ref[kh], h, preferred_element_type=jnp.float32)
            # Banded weight matmul: folds the 4 kw taps and the C_in -> C_out contraction.
            acc = acc + jnp.dot(rows.astype(jnp.bfloat16), m_ref[kh],
                                preferred_element_type=jnp.float32)
        z = acc + b_ref[...]                                 # (1, lanes) broadcast over rows
        h = jnp.where(z > 0.0, z, LEAK * z)                  # f32 epilogue
    out_ref[...] = h


# ----------------------- per-layer operand construction -------------------- #
def _layer_operands(w, b, batch, h_in, w_in):
    """Banded matrices for one conv4x4/s2/p1 layer (pure weight preprocessing).

    w: (C_out, C_in, 4, 4) f32, b: (C_out,) f32.
    Returns m_stack (4, w_in*C_in, w_out*C_out) bf16,
            s_stack (4, batch*h_out, batch*h_in) f32,
            bias_lane (1, w_out*C_out) f32.
    """
    c_out, c_in, kh_sz, kw_sz = w.shape
    h_out, w_out = h_in // STRIDE, w_in // STRIDE

    # delta[kw, wi, wo] = 1 iff input column wi is hit by tap kw of output column wo.
    kw_i = jnp.arange(kw_sz)[:, None, None]
    wi_i = jnp.arange(w_in)[None, :, None]
    wo_i = jnp.arange(w_out)[None, None, :]
    delta = (wi_i == STRIDE * wo_i + kw_i - PAD).astype(jnp.float32)     # (4, w_in, w_out)

    # m[kh, (wi, ci), (wo, co)] = sum_kw w[co, ci, kh, kw] * delta[kw, wi, wo]
    m = jnp.einsum('ocpk,kwv->pwcvo', w.astype(jnp.float32), delta)
    m = m.reshape(kh_sz, w_in * c_in, w_out * c_out).astype(jnp.bfloat16)

    # s[kh, (b, ho), (b, hi)] = 1 iff hi == 2*ho + kh - 1 (same batch element).
    kh_i = jnp.arange(kh_sz)[:, None, None]
    ho_i = jnp.arange(h_out)[None, :, None]
    hi_i = jnp.arange(h_in)[None, None, :]
    hsel = (hi_i == STRIDE * ho_i + kh_i - PAD).astype(jnp.float32)      # (4, h_out, h_in)
    eye_b = jnp.eye(batch, dtype=jnp.float32)
    s = jnp.einsum('ab,pij->paibj', eye_b, hsel)
    s = s.reshape(kh_sz, batch * h_out, batch * h_in)

    bias_lane = jnp.tile(b.astype(jnp.float32), w_out)[None, :]          # (1, w_out*c_out)
    return m, s, bias_lane


# --------------------------------- forward --------------------------------- #
@jax.jit
def d_net64_forward(x_var, params):
    """D_NET64.forward: x_code4 = img_code_s16(x_var). x_var: (B, 3, H, W) NCHW, f32 out."""
    batch, c0, h0, w0 = x_var.shape

    # NCHW -> (B*H, W*C): rows = (b, h), lanes = (w, c). Cheap XLA glue on the small input.
    x2 = jnp.transpose(x_var, (0, 2, 3, 1)).reshape(batch * h0, w0 * c0).astype(jnp.float32)

    inputs = [x2]
    in_specs = [pl.BlockSpec(x2.shape, lambda: (0, 0))]
    flops = 0
    bytes_accessed = x2.size * 4

    h_cur, w_cur, c_cur = h0, w0, c0
    for (w, b) in params:
        c_out = w.shape[0]
        h_out, w_out = h_cur // STRIDE, w_cur // STRIDE
        m, s, bias_lane = _layer_operands(w, b, batch, h_cur, w_cur)
        inputs += [m, s, bias_lane]
        in_specs += [
            pl.BlockSpec(m.shape, lambda: (0, 0, 0)),
            pl.BlockSpec(s.shape, lambda: (0, 0, 0)),
            pl.BlockSpec(bias_lane.shape, lambda: (0, 0)),
        ]
        flops += KSIZE * (2 * (batch * h_out) * (batch * h_cur) * (w_cur * c_cur)
                          + 2 * (batch * h_out) * (w_cur * c_cur) * (w_out * c_out))
        bytes_accessed += m.size * 2 + s.size * 4 + bias_lane.size * 4
        h_cur, w_cur, c_cur = h_out, w_out, c_out

    out_rows, out_lanes = batch * h_cur, w_cur * c_cur
    bytes_accessed += out_rows * out_lanes * 4

    # Single fused call; everything is VMEM resident (<< 32 MiB on all generations).
    # TODO(synk): for production sizes (B>=32, 64x64 images, ndf=64) tile the row axis with a
    # grid + dimension_semantics=("parallel",) so Mosaic can shard across v7x's 2 TensorCores.
    out2 = pl.pallas_call(
        _fused_dnet64_kernel,
        out_shape=jax.ShapeDtypeStruct((out_rows, out_lanes), jnp.float32),
        in_specs=in_specs,
        out_specs=pl.BlockSpec((out_rows, out_lanes), lambda: (0, 0)),
        cost_estimate=pl.CostEstimate(flops=flops, transcendentals=0,
                                      bytes_accessed=bytes_accessed),
        compiler_params=pltpu.CompilerParams(vmem_limit_bytes=32 * 1024 * 1024),
    )(*inputs)

    # (B*H4, W4*C4) -> NCHW
    out = out2.reshape(batch, h_cur, w_cur, c_cur)
    return jnp.transpose(out, (0, 3, 1, 2))
    # TODO(synk): COND_DNET / UNCOND_DNET heads exist in __init__ but are not used by
    # D_NET64.forward, so they are intentionally not implemented here.


# -------------------- spectral norm (weight preprocessing) ----------------- #
def spectral_normalize(w, key, n_power_iter=1):
    """W / sigma(W) via power iteration (deterministic stand-in for torch SpectralNorm).

    TODO(synk): PyTorch's SpectralNorm persists its `u` buffer across calls; here a fresh
    deterministic u is drawn at init, so values differ from a PyTorch checkpoint.
    """
    c_out = w.shape[0]
    w_mat = w.reshape(c_out, -1)
    u = jax.random.normal(key, (c_out,), dtype=jnp.float32)
    u = u / (jnp.linalg.norm(u) + 1e-12)
    v = None
    for _ in range(n_power_iter):
        v = w_mat.T @ u
        v = v / (jnp.linalg.norm(v) + 1e-12)
        u = w_mat @ v
        u = u / (jnp.linalg.norm(u) + 1e-12)
    sigma = u @ (w_mat @ v)
    return w / sigma


# --------------------------- parameter construction ------------------------ #
def init_d_net64_params(key, ndf=NDF):
    """Deterministic synthetic weights for encode_image_by_16times(ndf)."""
    chans = [(3, ndf), (ndf, ndf * 2), (ndf * 2, ndf * 4), (ndf * 4, ndf * 8)]
    params = []
    for i, (cin, cout) in enumerate(chans):
        kw_key, kb_key, ku_key = jax.random.split(jax.random.fold_in(key, i), 3)
        w = 0.02 * jax.random.normal(kw_key, (cout, cin, 4, 4), dtype=jnp.float32)
        w = spectral_normalize(w, ku_key)
        b = 0.01 * jax.random.normal(kb_key, (cout,), dtype=jnp.float32)
        params.append((w, b))
    return params


# ------------------------------- reference --------------------------------- #
def reference_forward(x_var, params):
    """Plain-XLA reference (lax.conv), used only for a loose numerical check."""
    h = x_var
    for (w, b) in params:
        h = jax.lax.conv_general_dilated(
            h, w, window_strides=(STRIDE, STRIDE),
            padding=((PAD, PAD), (PAD, PAD)),
            dimension_numbers=('NCHW', 'OIHW', 'NCHW'))
        h = h + b[None, :, None, None]
        h = jnp.where(h > 0.0, h, LEAK * h)
    return h


if __name__ == "__main__":
    key = jax.random.PRNGKey(0)
    k_x, k_p = jax.random.split(key)

    B, H, W = 2, 32, 32                         # 3-channel image; /16 -> 2x2 spatial output
    x = jax.random.normal(k_x, (B, 3, H, W), dtype=jnp.float32)
    params = init_d_net64_params(k_p, ndf=NDF)

    out = jax.block_until_ready(d_net64_forward(x, params))

    expected_shape = (B, NDF * 8, H // 16, W // 16)
    assert out.shape == expected_shape, (out.shape, expected_shape)
    assert out.dtype == jnp.float32

    # Loose check vs the XLA reference (bf16 MXU inputs => ~1e-3 relative error expected).
    ref = jax.block_until_ready(reference_forward(x, params))
    num = jnp.sqrt(jnp.sum((out - ref) ** 2))
    den = jnp.sqrt(jnp.sum(ref ** 2)) + 1e-12
    rel_err = float(num / den)
    assert rel_err < 0.1, f"relative L2 error vs reference too large: {rel_err}"

    print("KERNEL_OK")
</pallas_src>

<mosaic_0001>
module attributes {stable_mosaic.version = 11 : i64} {
  func.func @_fused_dnet64_kernel(%arg0: memref<64x96xf32, #tpu.memory_space<vmem>>, %arg1: memref<4x96x128xbf16, #tpu.memory_space<vmem>>, %arg2: memref<4x32x64xf32, #tpu.memory_space<vmem>>, %arg3: memref<1x128xf32, #tpu.memory_space<vmem>>, %arg4: memref<4x128x128xbf16, #tpu.memory_space<vmem>>, %arg5: memref<4x16x32xf32, #tpu.memory_space<vmem>>, %arg6: memref<1x128xf32, #tpu.memory_space<vmem>>, %arg7: memref<4x128x128xbf16, #tpu.memory_space<vmem>>, %arg8: memref<4x8x16xf32, #tpu.memory_space<vmem>>, %arg9: memref<1x128xf32, #tpu.memory_space<vmem>>, %arg10: memref<4x128x128xbf16, #tpu.memory_space<vmem>>, %arg11: memref<4x4x8xf32, #tpu.memory_space<vmem>>, %arg12: memref<1x128xf32, #tpu.memory_space<vmem>>, %arg13: memref<4x128xf32, #tpu.memory_space<vmem>>) attributes {dimension_semantics = [], scalar_prefetch = 0 : i64, scratch_operands = 0 : i64, tpu.core_type = #tpu.core_type<tc>} {
    %c0 = arith.constant 0 : index
    %c0_0 = arith.constant 0 : index
    %0 = vector.load %arg0[%c0, %c0_0] : memref<64x96xf32, #tpu.memory_space<vmem>>, vector<64x96xf32>
    %cst = arith.constant 0.000000e+00 : f32
    %1 = vector.broadcast %cst : f32 to vector<32x128xf32>
    %c0_1 = arith.constant 0 : index
    %c0_2 = arith.constant 0 : index
    %c0_3 = arith.constant 0 : index
    %2 = vector.load %arg2[%c0_1, %c0_2, %c0_3] : memref<4x32x64xf32, #tpu.memory_space<vmem>>, vector<1x32x64xf32>
    %3 = vector.shape_cast %2 : vector<1x32x64xf32> to vector<32x64xf32>
    %cst_4 = arith.constant dense<0.000000e+00> : vector<32x96xf32>
    %4 = tpu.matmul %3, %0, %cst_4 {dimension_numbers = #tpu.dot_dimension_numbers<[1], [0], [0], [1], [0, 0, 1, 1], [], []>} : vector<32x64xf32>, vector<64x96xf32>, vector<32x96xf32> -> vector<32x96xf32>
    %5 = arith.truncf %4 : vector<32x96xf32> to vector<32x96xbf16>
    %c0_5 = arith.constant 0 : index
    %c0_6 = arith.constant 0 : index
    %c0_7 = arith.constant 0 : index
    %6 = vector.load %arg1[%c0_5, %c0_6, %c0_7] : memref<4x96x128xbf16, #tpu.memory_space<vmem>>, vector<1x96x128xbf16>
    %7 = vector.shape_cast %6 : vector<1x96x128xbf16> to vector<96x128xbf16>
    %cst_8 = arith.constant dense<0.000000e+00> : vector<32x128xf32>
    %8 = tpu.matmul %5, %7, %cst_8 {dimension_numbers = #tpu.dot_dimension_numbers<[1], [0], [0], [1], [0, 0, 1, 1], [], []>} : vector<32x96xbf16>, vector<96x128xbf16>, vector<32x128xf32> -> vector<32x128xf32>
    %9 = arith.addf %1, %8 : vector<32x128xf32>
    %c1 = arith.constant 1 : index
    %c0_9 = arith.constant 0 : index
    %c0_10 = arith.constant 0 : index
    %10 = vector.load %arg2[%c1, %c0_9, %c0_10] : memref<4x32x64xf32, #tpu.memory_space<vmem>>, vector<1x32x64xf32>
    %11 = vector.shape_cast %10 : vector<1x32x64xf32> to vector<32x64xf32>
    %cst_11 = arith.constant dense<0.000000e+00> : vector<32x96xf32>
    %12 = tpu.matmul %11, %0, %cst_11 {dimension_numbers = #tpu.dot_dimension_numbers<[1], [0], [0], [1], [0, 0, 1, 1], [], []>} : vector<32x64xf32>, vector<64x96xf32>, vector<32x96xf32> -> vector<32x96xf32>
    %13 = arith.truncf %12 : vector<32x96xf32> to vector<32x96xbf16>
    %c1_12 = arith.constant 1 : index
    %c0_13 = arith.constant 0 : index
    %c0_14 = arith.constant 0 : index
    %14 = vector.load %arg1[%c1_12, %c0_13, %c0_14] : memref<4x96x128xbf16, #tpu.memory_space<vmem>>, vector<1x96x128xbf16>
    %15 = vector.shape_cast %14 : vector<1x96x128xbf16> to vector<96x128xbf16>
    %cst_15 = arith.constant dense<0.000000e+00> : vector<32x128xf32>
    %16 = tpu.matmul %13, %15, %cst_15 {dimension_numbers = #tpu.dot_dimension_numbers<[1], [0], [0], [1], [0, 0, 1, 1], [], []>} : vector<32x96xbf16>, vector<96x128xbf16>, vector<32x128xf32> -> vector<32x128xf32>
    %17 = arith.addf %9, %16 : vector<32x128xf32>
    %c2 = arith.constant 2 : index
    %c0_16 = arith.constant 0 : index
    %c0_17 = arith.constant 0 : index
    %18 = vector.load %arg2[%c2, %c0_16, %c0_17] : memref<4x32x64xf32, #tpu.memory_space<vmem>>, vector<1x32x64xf32>
    %19 = vector.shape_cast %18 : vector<1x32x64xf32> to vector<32x64xf32>
    %cst_18 = arith.constant dense<0.000000e+00> : vector<32x96xf32>
    %20 = tpu.matmul %19, %0, %cst_18 {dimension_numbers = #tpu.dot_dimension_numbers<[1], [0], [0], [1], [0, 0, 1, 1], [], []>} : vector<32x64xf32>, vector<64x96xf32>, vector<32x96xf32> -> vector<32x96xf32>
    %21 = arith.truncf %20 : vector<32x96xf32> to vector<32x96xbf16>
    %c2_19 = arith.constant 2 : index
    %c0_20 = arith.constant 0 : index
    %c0_21 = arith.constant 0 : index
    %22 = vector.load %arg1[%c2_19, %c0_20, %c0_21] : memref<4x96x128xbf16, #tpu.memory_space<vmem>>, vector<1x96x128xbf16>
    %23 = vector.shape_cast %22 : vector<1x96x128xbf16> to vector<96x128xbf16>
    %cst_22 = arith.constant dense<0.000000e+00> : vector<32x128xf32>
    %24 = tpu.matmul %21, %23, %cst_22 {dimension_numbers = #tpu.dot_dimension_numbers<[1], [0], [0], [1], [0, 0, 1, 1], [], []>} : vector<32x96xbf16>, vector<96x128xbf16>, vector<32x128xf32> -> vector<32x128xf32>
    %25 = arith.addf %17, %24 : vector<32x128xf32>
    %c3 = arith.constant 3 : index
    %c0_23 = arith.constant 0 : index
    %c0_24 = arith.constant 0 : index
    %26 = vector.load %arg2[%c3, %c0_23, %c0_24] : memref<4x32x64xf32, #tpu.memory_space<vmem>>, vector<1x32x64xf32>
    %27 = vector.shape_cast %26 : vector<1x32x64xf32> to vector<32x64xf32>
    %cst_25 = arith.constant dense<0.000000e+00> : vector<32x96xf32>
    %28 = tpu.matmul %27, %0, %cst_25 {dimension_numbers = #tpu.dot_dimension_numbers<[1], [0], [0], [1], [0, 0, 1, 1], [], []>} : vector<32x64xf32>, vector<64x96xf32>, vector<32x96xf32> -> vector<32x96xf32>
    %29 = arith.truncf %28 : vector<32x96xf32> to vector<32x96xbf16>
    %c3_26 = arith.constant 3 : index
    %c0_27 = arith.constant 0 : index
    %c0_28 = arith.constant 0 : index
    %30 = vector.load %arg1[%c3_26, %c0_27, %c0_28] : memref<4x96x128xbf16, #tpu.memory_space<vmem>>, vector<1x96x128xbf16>
    %31 = vector.shape_cast %30 : vector<1x96x128xbf16> to vector<96x128xbf16>
    %cst_29 = arith.constant dense<0.000000e+00> : vector<32x128xf32>
    %32 = tpu.matmul %29, %31, %cst_29 {dimension_numbers = #tpu.dot_dimension_numbers<[1], [0], [0], [1], [0, 0, 1, 1], [], []>} : vector<32x96xbf16>, vector<96x128xbf16>, vector<32x128xf32> -> vector<32x128xf32>
    %33 = arith.addf %25, %32 : vector<32x128xf32>
    %c0_30 = arith.constant 0 : index
    %c0_31 = arith.constant 0 : index
    %34 = vector.load %arg3[%c0_30, %c0_31] : memref<1x128xf32, #tpu.memory_space<vmem>>, vector<1x128xf32>
    %35 = vector.broadcast %34 : vector<1x128xf32> to vector<32x128xf32>
    %36 = arith.addf %33, %35 : vector<32x128xf32>
    %cst_32 = arith.constant 0.000000e+00 : f32
    %37 = vector.broadcast %cst_32 : f32 to vector<32x128xf32>
    %38 = arith.cmpf ogt, %36, %37 : vector<32x128xf32>
    %cst_33 = arith.constant 2.000000e-01 : f32
    %39 = vector.broadcast %cst_33 : f32 to vector<32x128xf32>
    %40 = arith.mulf %39, %36 : vector<32x128xf32>
    %41 = arith.select %38, %36, %40 : vector<32x128xi1>, vector<32x128xf32>
    %cst_34 = arith.constant 0.000000e+00 : f32
    %42 = vector.broadcast %cst_34 : f32 to vector<16x128xf32>
    %c0_35 = arith.constant 0 : index
    %c0_36 = arith.constant 0 : index
    %c0_37 = arith.constant 0 : index
    %43 = vector.load %arg5[%c0_35, %c0_36, %c0_37] : memref<4x16x32xf32, #tpu.memory_space<vmem>>, vector<1x16x32xf32>
    %44 = vector.shape_cast %43 : vector<1x16x32xf32> to vector<16x32xf32>
    %cst_38 = arith.constant dense<0.000000e+00> : vector<16x128xf32>
    %45 = tpu.matmul %44, %41, %cst_38 {dimension_numbers = #tpu.dot_dimension_numbers<[1], [0], [0], [1], [0, 0, 1, 1], [], []>} : vector<16x32xf32>, vector<32x128xf32>, vector<16x128xf32> -> vector<16x128xf32>
    %46 = arith.truncf %45 : vector<16x128xf32> to vector<16x128xbf16>
    %c0_39 = arith.constant 0 : index
    %c0_40 = arith.constant 0 : index
    %c0_41 = arith.constant 0 : index
    %47 = vector.load %arg4[%c0_39, %c0_40, %c0_41] : memref<4x128x128xbf16, #tpu.memory_space<vmem>>, vector<1x128x128xbf16>
    %48 = vector.shape_cast %47 : vector<1x128x128xbf16> to vector<128x128xbf16>
    %cst_42 = arith.constant dense<0.000000e+00> : vector<16x128xf32>
    %49 = tpu.matmul %46, %48, %cst_42 {dimension_numbers = #tpu.dot_dimension_numbers<[1], [0], [0], [1], [0, 0, 1, 1], [], []>} : vector<16x128xbf16>, vector<128x128xbf16>, vector<16x128xf32> -> vector<16x128xf32>
    %50 = arith.addf %42, %49 : vector<16x128xf32>
    %c1_43 = arith.constant 1 : index
    %c0_44 = arith.constant 0 : index
    %c0_45 = arith.constant 0 : index
    %51 = vector.load %arg5[%c1_43, %c0_44, %c0_45] : memref<4x16x32xf32, #tpu.memory_space<vmem>>, vector<1x16x32xf32>
    %52 = vector.shape_cast %51 : vector<1x16x32xf32> to vector<16x32xf32>
    %cst_46 = arith.constant dense<0.000000e+00> : vector<16x128xf32>
    %53 = tpu.matmul %52, %41, %cst_46 {dimension_numbers = #tpu.dot_dimension_numbers<[1], [0], [0], [1], [0, 0, 1, 1], [], []>} : vector<16x32xf32>, vector<32x128xf32>, vector<16x128xf32> -> vector<16x128xf32>
    %54 = arith.truncf %53 : vector<16x128xf32> to vector<16x128xbf16>
    %c1_47 = arith.constant 1 : index
    %c0_48 = arith.constant 0 : index
    %c0_49 = arith.constant 0 : index
    %55 = vector.load %arg4[%c1_47, %c0_48, %c0_49] : memref<4x128x128xbf16, #tpu.memory_space<vmem>>, vector<1x128x128xbf16>
    %56 = vector.shape_cast %55 : vector<1x128x128xbf16> to vector<128x128xbf16>
    %cst_50 = arith.constant dense<0.000000e+00> : vector<16x128xf32>
    %57 = tpu.matmul %54, %56, %cst_50 {dimension_numbers = #tpu.dot_dimension_numbers<[1], [0], [0], [1], [0, 0, 1, 1], [], []>} : vector<16x128xbf16>, vector<128x128xbf16>, vector<16x128xf32> -> vector<16x128xf32>
    %58 = arith.addf %50, %57 : vector<16x128xf32>
    %c2_51 = arith.constant 2 : index
    %c0_52 = arith.constant 0 : index
    %c0_53 = arith.constant 0 : index
    %59 = vector.load %arg5[%c2_51, %c0_52, %c0_53] : memref<4x16x32xf32, #tpu.memory_space<vmem>>, vector<1x16x32xf32>
    %60 = vector.shape_cast %59 : vector<1x16x32xf32> to vector<16x32xf32>
    %cst_54 = arith.constant dense<0.000000e+00> : vector<16x128xf32>
    %61 = tpu.matmul %60, %41, %cst_54 {dimension_numbers = #tpu.dot_dimension_numbers<[1], [0], [0], [1], [0, 0, 1, 1], [], []>} : vector<16x32xf32>, vector<32x128xf32>, vector<16x128xf32> -> vector<16x128xf32>
    %62 = arith.truncf %61 : vector<16x128xf32> to vector<16x128xbf16>
    %c2_55 = arith.constant 2 : index
    %c0_56 = arith.constant 0 : index
    %c0_57 = arith.constant 0 : index
    %63 = vector.load %arg4[%c2_55, %c0_56, %c0_57] : memref<4x128x128xbf16, #tpu.memory_space<vmem>>, vector<1x128x128xbf16>
    %64 = vector.shape_cast %63 : vector<1x128x128xbf16> to vector<128x128xbf16>
    %cst_58 = arith.constant dense<0.000000e+00> : vector<16x128xf32>
    %65 = tpu.matmul %62, %64, %cst_58 {dimension_numbers = #tpu.dot_dimension_numbers<[1], [0], [0], [1], [0, 0, 1, 1], [], []>} : vector<16x128xbf16>, vector<128x128xbf16>, vector<16x128xf32> -> vector<16x128xf32>
    %66 = arith.addf %58, %65 : vector<16x128xf32>
    %c3_59 = arith.constant 3 : index
    %c0_60 = arith.constant 0 : index
    %c0_61 = arith.constant 0 : index
    %67 = vector.load %arg5[%c3_59, %c0_60, %c0_61] : memref<4x16x32xf32, #tpu.memory_space<vmem>>, vector<1x16x32xf32>
    %68 = vector.shape_cast %67 : vector<1x16x32xf32> to vector<16x32xf32>
    %cst_62 = arith.constant dense<0.000000e+00> : vector<16x128xf32>
    %69 = tpu.matmul %68, %41, %cst_62 {dimension_numbers = #tpu.dot_dimension_numbers<[1], [0], [0], [1], [0, 0, 1, 1], [], []>} : vector<16x32xf32>, vector<32x128xf32>, vector<16x128xf32> -> vector<16x128xf32>
    %70 = arith.truncf %69 : vector<16x128xf32> to vector<16x128xbf16>
    %c3_63 = arith.constant 3 : index
    %c0_64 = arith.constant 0 : index
    %c0_65 = arith.constant 0 : index
    %71 = vector.load %arg4[%c3_63, %c0_64, %c0_65] : memref<4x128x128xbf16, #tpu.memory_space<vmem>>, vector<1x128x128xbf16>
    %72 = vector.shape_cast %71 : vector<1x128x128xbf16> to vector<128x128xbf16>
    %cst_66 = arith.constant dense<0.000000e+00> : vector<16x128xf32>
    %73 = tpu.matmul %70, %72, %cst_66 {dimension_numbers = #tpu.dot_dimension_numbers<[1], [0], [0], [1], [0, 0, 1, 1], [], []>} : vector<16x128xbf16>, vector<128x128xbf16>, vector<16x128xf32> -> vector<16x128xf32>
    %74 = arith.addf %66, %73 : vector<16x128xf32>
    %c0_67 = arith.constant 0 : index
    %c0_68 = arith.constant 0 : index
    %75 = vector.load %arg6[%c0_67, %c0_68] : memref<1x128xf32, #tpu.memory_space<vmem>>, vector<1x128xf32>
    %76 = vector.broadcast %75 : vector<1x128xf32> to vector<16x128xf32>
    %77 = arith.addf %74, %76 : vector<16x128xf32>
    %cst_69 = arith.constant 0.000000e+00 : f32
    %78 = vector.broadcast %cst_69 : f32 to vector<16x128xf32>
    %79 = arith.cmpf ogt, %77, %78 : vector<16x128xf32>
    %cst_70 = arith.constant 2.000000e-01 : f32
    %80 = vector.broadcast %cst_70 : f32 to vector<16x128xf32>
    %81 = arith.mulf %80, %77 : vector<16x128xf32>
    %82 = arith.select %79, %77, %81 : vector<16x128xi1>, vector<16x128xf32>
    %cst_71 = arith.constant 0.000000e+00 : f32
    %83 = vector.broadcast %cst_71 : f32 to vector<8x128xf32>
    %c0_72 = arith.constant 0 : index
    %c0_73 = arith.constant 0 : index
    %c0_74 = arith.constant 0 : index
    %84 = vector.load %arg8[%c0_72, %c0_73, %c0_74] : memref<4x8x16xf32, #tpu.memory_space<vmem>>, vector<1x8x16xf32>
    %85 = vector.shape_cast %84 : vector<1x8x16xf32> to vector<8x16xf32>
    %cst_75 = arith.constant dense<0.000000e+00> : vector<8x128xf32>
    %86 = tpu.matmul %85, %82, %cst_75 {dimension_numbers = #tpu.dot_dimension_numbers<[1], [0], [0], [1], [0, 0, 1, 1], [], []>} : vector<8x16xf32>, vector<16x128xf32>, vector<8x128xf32> -> vector<8x128xf32>
    %87 = arith.truncf %86 : vector<8x128xf32> to vector<8x128xbf16>
    %c0_76 = arith.constant 0 : index
    %c0_77 = arith.constant 0 : index
    %c0_78 = arith.constant 0 : index
    %88 = vector.load %arg7[%c0_76, %c0_77, %c0_78] : memref<4x128x128xbf16, #tpu.memory_space<vmem>>, vector<1x128x128xbf16>
    %89 = vector.shape_cast %88 : vector<1x128x128xbf16> to vector<128x128xbf16>
    %cst_79 = arith.constant dense<0.000000e+00> : vector<8x128xf32>
    %90 = tpu.matmul %87, %89, %cst_79 {dimension_numbers = #tpu.dot_dimension_numbers<[1], [0], [0], [1], [0, 0, 1, 1], [], []>} : vector<8x128xbf16>, vector<128x128xbf16>, vector<8x128xf32> -> vector<8x128xf32>
    %91 = arith.addf %83, %90 : vector<8x128xf32>
    %c1_80 = arith.constant 1 : index
    %c0_81 = arith.constant 0 : index
    %c0_82 = arith.constant 0 : index
    %92 = vector.load %arg8[%c1_80, %c0_81, %c0_82] : memref<4x8x16xf32, #tpu.memory_space<vmem>>, vector<1x8x16xf32>
    %93 = vector.shape_cast %92 : vector<1x8x16xf32> to vector<8x16xf32>
    %cst_83 = arith.constant dense<0.000000e+00> : vector<8x128xf32>
    %94 = tpu.matmul %93, %82, %cst_83 {dimension_numbers = #tpu.dot_dimension_numbers<[1], [0], [0], [1], [0, 0, 1, 1], [], []>} : vector<8x16xf32>, vector<16x128xf32>, vector<8x128xf32> -> vector<8x128xf32>
    %95 = arith.truncf %94 : vector<8x128xf32> to vector<8x128xbf16>
    %c1_84 = arith.constant 1 : index
    %c0_85 = arith.constant 0 : index
    %c0_86 = arith.constant 0 : index
    %96 = vector.load %arg7[%c1_84, %c0_85, %c0_86] : memref<4x128x128xbf16, #tpu.memory_space<vmem>>, vector<1x128x128xbf16>
    %97 = vector.shape_cast %96 : vector<1x128x128xbf16> to vector<128x128xbf16>
    %cst_87 = arith.constant dense<0.000000e+00> : vector<8x128xf32>
    %98 = tpu.matmul %95, %97, %cst_87 {dimension_numbers = #tpu.dot_dimension_numbers<[1], [0], [0], [1], [0, 0, 1, 1], [], []>} : vector<8x128xbf16>, vector<128x128xbf16>, vector<8x128xf32> -> vector<8x128xf32>
    %99 = arith.addf %91, %98 : vector<8x128xf32>
    %c2_88 = arith.constant 2 : index
    %c0_89 = arith.constant 0 : index
    %c0_90 = arith.constant 0 : index
    %100 = vector.load %arg8[%c2_88, %c0_89, %c0_90] : memref<4x8x16xf32, #tpu.memory_space<vmem>>, vector<1x8x16xf32>
    %101 = vector.shape_cast %100 : vector<1x8x16xf32> to vector<8x16xf32>
    %cst_91 = arith.constant dense<0.000000e+00> : vector<8x128xf32>
    %102 = tpu.matmul %101, %82, %cst_91 {dimension_numbers = #tpu.dot_dimension_numbers<[1], [0], [0], [1], [0, 0, 1, 1], [], []>} : vector<8x16xf32>, vector<16x128xf32>, vector<8x128xf32> -> vector<8x128xf32>
    %103 = arith.truncf %102 : vector<8x128xf32> to vector<8x128xbf16>
    %c2_92 = arith.constant 2 : index
    %c0_93 = arith.constant 0 : index
    %c0_94 = arith.constant 0 : index
    %104 = vector.load %arg7[%c2_92, %c0_93, %c0_94] : memref<4x128x128xbf16, #tpu.memory_space<vmem>>, vector<1x128x128xbf16>
    %105 = vector.shape_cast %104 : vector<1x128x128xbf16> to vector<128x128xbf16>
    %cst_95 = arith.constant dense<0.000000e+00> : vector<8x128xf32>
    %106 = tpu.matmul %103, %105, %cst_95 {dimension_numbers = #tpu.dot_dimension_numbers<[1], [0], [0], [1], [0, 0, 1, 1], [], []>} : vector<8x128xbf16>, vector<128x128xbf16>, vector<8x128xf32> -> vector<8x128xf32>
    %107 = arith.addf %99, %106 : vector<8x128xf32>
    %c3_96 = arith.constant 3 : index
    %c0_97 = arith.constant 0 : index
    %c0_98 = arith.constant 0 : index
    %108 = vector.load %arg8[%c3_96, %c0_97, %c0_98] : memref<4x8x16xf32, #tpu.memory_space<vmem>>, vector<1x8x16xf32>
    %109 = vector.shape_cast %108 : vector<1x8x16xf32> to vector<8x16xf32>
    %cst_99 = arith.constant dense<0.000000e+00> : vector<8x128xf32>
    %110 = tpu.matmul %109, %82, %cst_99 {dimension_numbers = #tpu.dot_dimension_numbers<[1], [0], [0], [1], [0, 0, 1, 1], [], []>} : vector<8x16xf32>, vector<16x128xf32>, vector<8x128xf32> -> vector<8x128xf32>
    %111 = arith.truncf %110 : vector<8x128xf32> to vector<8x128xbf16>
    %c3_100 = arith.constant 3 : index
    %c0_101 = arith.constant 0 : index
    %c0_102 = arith.constant 0 : index
    %112 = vector.load %arg7[%c3_100, %c0_101, %c0_102] : memref<4x128x128xbf16, #tpu.memory_space<vmem>>, vector<1x128x128xbf16>
    %113 = vector.shape_cast %112 : vector<1x128x128xbf16> to vector<128x128xbf16>
    %cst_103 = arith.constant dense<0.000000e+00> : vector<8x128xf32>
    %114 = tpu.matmul %111, %113, %cst_103 {dimension_numbers = #tpu.dot_dimension_numbers<[1], [0], [0], [1], [0, 0, 1, 1], [], []>} : vector<8x128xbf16>, vector<128x128xbf16>, vector<8x128xf32> -> vector<8x128xf32>
    %115 = arith.addf %107, %114 : vector<8x128xf32>
    %c0_104 = arith.constant 0 : index
    %c0_105 = arith.constant 0 : index
    %116 = vector.load %arg9[%c0_104, %c0_105] : memref<1x128xf32, #tpu.memory_space<vmem>>, vector<1x128xf32>
    %117 = vector.broadcast %116 : vector<1x128xf32> to vector<8x128xf32>
    %118 = arith.addf %115, %117 : vector<8x128xf32>
    %cst_106 = arith.constant 0.000000e+00 : f32
    %119 = vector.broadcast %cst_106 : f32 to vector<8x128xf32>
    %120 = arith.cmpf ogt, %118, %119 : vector<8x128xf32>
    %cst_107 = arith.constant 2.000000e-01 : f32
    %121 = vector.broadcast %cst_107 : f32 to vector<8x128xf32>
    %122 = arith.mulf %121, %118 : vector<8x128xf32>
    %123 = arith.select %120, %118, %122 : vector<8x128xi1>, vector<8x128xf32>
    %cst_108 = arith.constant 0.000000e+00 : f32
    %124 = vector.broadcast %cst_108 : f32 to vector<4x128xf32>
    %c0_109 = arith.constant 0 : index
    %c0_110 = arith.constant 0 : index
    %c0_111 = arith.constant 0 : index
    %125 = vector.load %arg11[%c0_109, %c0_110, %c0_111] : memref<4x4x8xf32, #tpu.memory_space<vmem>>, vector<1x4x8xf32>
    %126 = vector.shape_cast %125 : vector<1x4x8xf32> to vector<4x8xf32>
    %cst_112 = arith.constant dense<0.000000e+00> : vector<4x128xf32>
    %127 = tpu.matmul %126, %123, %cst_112 {dimension_numbers = #tpu.dot_dimension_numbers<[1], [0], [0], [1], [0, 0, 1, 1], [], []>} : vector<4x8xf32>, vector<8x128xf32>, vector<4x128xf32> -> vector<4x128xf32>
    %128 = arith.truncf %127 : vector<4x128xf32> to vector<4x128xbf16>
    %c0_113 = arith.constant 0 : index
    %c0_114 = arith.constant 0 : index
    %c0_115 = arith.constant 0 : index
    %129 = vector.load %arg10[%c0_113, %c0_114, %c0_115] : memref<4x128x128xbf16, #tpu.memory_space<vmem>>, vector<1x128x128xbf16>
    %130 = vector.shape_cast %129 : vector<1x128x128xbf16> to vector<128x128xbf16>
    %cst_116 = arith.constant dense<0.000000e+00> : vector<4x128xf32>
    %131 = tpu.matmul %128, %130, %cst_116 {dimension_numbers = #tpu.dot_dimension_numbers<[1], [0], [0], [1], [0, 0, 1, 1], [], []>} : vector<4x128xbf16>, vector<128x128xbf16>, vector<4x128xf32> -> vector<4x128xf32>
    %132 = arith.addf %124, %131 : vector<4x128xf32>
    %c1_117 = arith.constant 1 : index
    %c0_118 = arith.constant 0 : index
    %c0_119 = arith.constant 0 : index
    %133 = vector.load %arg11[%c1_117, %c0_118, %c0_119] : memref<4x4x8xf32, #tpu.memory_space<vmem>>, vector<1x4x8xf32>
    %134 = vector.shape_cast %133 : vector<1x4x8xf32> to vector<4x8xf32>
    %cst_120 = arith.constant dense<0.000000e+00> : vector<4x128xf32>
    %135 = tpu.matmul %134, %123, %cst_120 {dimension_numbers = #tpu.dot_dimension_numbers<[1], [0], [0], [1], [0, 0, 1, 1], [], []>} : vector<4x8xf32>, vector<8x128xf32>, vector<4x128xf32> -> vector<4x128xf32>
    %136 = arith.truncf %135 : vector<4x128xf32> to vector<4x128xbf16>
    %c1_121 = arith.constant 1 : index
    %c0_122 = arith.constant 0 : index
    %c0_123 = arith.constant 0 : index
    %137 = vector.load %arg10[%c1_121, %c0_122, %c0_123] : memref<4x128x128xbf16, #tpu.memory_space<vmem>>, vector<1x128x128xbf16>
    %138 = vector.shape_cast %137 : vector<1x128x128xbf16> to vector<128x128xbf16>
    %cst_124 = arith.constant dense<0.000000e+00> : vector<4x128xf32>
    %139 = tpu.matmul %136, %138, %cst_124 {dimension_numbers = #tpu.dot_dimension_numbers<[1], [0], [0], [1], [0, 0, 1, 1], [], []>} : vector<4x128xbf16>, vector<128x128xbf16>, vector<4x128xf32> -> vector<4x128xf32>
    %140 = arith.addf %132, %139 : vector<4x128xf32>
    %c2_125 = arith.constant 2 : index
    %c0_126 = arith.constant 0 : index
    %c0_127 = arith.constant 0 : index
    %141 = vector.load %arg11[%c2_125, %c0_126, %c0_127] : memref<4x4x8xf32, #tpu.memory_space<vmem>>, vector<1x4x8xf32>
    %142 = vector.shape_cast %141 : vector<1x4x8xf32> to vector<4x8xf32>
    %cst_128 = arith.constant dense<0.000000e+00> : vector<4x128xf32>
    %143 = tpu.matmul %142, %123, %cst_128 {dimension_numbers = #tpu.dot_dimension_numbers<[1], [0], [0], [1], [0, 0, 1, 1], [], []>} : vector<4x8xf32>, vector<8x128xf32>, vector<4x128xf32> -> vector<4x128xf32>
    %144 = arith.truncf %143 : vector<4x128xf32> to vector<4x128xbf16>
    %c2_129 = arith.constant 2 : index
    %c0_130 = arith.constant 0 : index
    %c0_131 = arith.constant 0 : index
    %145 = vector.load %arg10[%c2_129, %c0_130, %c0_131] : memref<4x128x128xbf16, #tpu.memory_space<vmem>>, vector<1x128x128xbf16>
    %146 = vector.shape_cast %145 : vector<1x128x128xbf16> to vector<128x128xbf16>
    %cst_132 = arith.constant dense<0.000000e+00> : vector<4x128xf32>
    %147 = tpu.matmul %144, %146, %cst_132 {dimension_numbers = #tpu.dot_dimension_numbers<[1], [0], [0], [1], [0, 0, 1, 1], [], []>} : vector<4x128xbf16>, vector<128x128xbf16>, vector<4x128xf32> -> vector<4x128xf32>
    %148 = arith.addf %140, %147 : vector<4x128xf32>
    %c3_133 = arith.constant 3 : index
    %c0_134 = arith.constant 0 : index
    %c0_135 = arith.constant 0 : index
    %149 = vector.load %arg11[%c3_133, %c0_134, %c0_135] : memref<4x4x8xf32, #tpu.memory_space<vmem>>, vector<1x4x8xf32>
    %150 = vector.shape_cast %149 : vector<1x4x8xf32> to vector<4x8xf32>
    %cst_136 = arith.constant dense<0.000000e+00> : vector<4x128xf32>
    %151 = tpu.matmul %150, %123, %cst_136 {dimension_numbers = #tpu.dot_dimension_numbers<[1], [0], [0], [1], [0, 0, 1, 1], [], []>} : vector<4x8xf32>, vector<8x128xf32>, vector<4x128xf32> -> vector<4x128xf32>
    %152 = arith.truncf %151 : vector<4x128xf32> to vector<4x128xbf16>
    %c3_137 = arith.constant 3 : index
    %c0_138 = arith.constant 0 : index
    %c0_139 = arith.constant 0 : index
    %153 = vector.load %arg10[%c3_137, %c0_138, %c0_139] : memref<4x128x128xbf16, #tpu.memory_space<vmem>>, vector<1x128x128xbf16>
    %154 = vector.shape_cast %153 : vector<1x128x128xbf16> to vector<128x128xbf16>
    %cst_140 = arith.constant dense<0.000000e+00> : vector<4x128xf32>
    %155 = tpu.matmul %152, %154, %cst_140 {dimension_numbers = #tpu.dot_dimension_numbers<[1], [0], [0], [1], [0, 0, 1, 1], [], []>} : vector<4x128xbf16>, vector<128x128xbf16>, vector<4x128xf32> -> vector<4x128xf32>
    %156 = arith.addf %148, %155 : vector<4x128xf32>
    %c0_141 = arith.constant 0 : index
    %c0_142 = arith.constant 0 : index
    %157 = vector.load %arg12[%c0_141, %c0_142] : memref<1x128xf32, #tpu.memory_space<vmem>>, vector<1x128xf32>
    %158 = vector.broadcast %157 : vector<1x128xf32> to vector<4x128xf32>
    %159 = arith.addf %156, %158 : vector<4x128xf32>
    %cst_143 = arith.constant 0.000000e+00 : f32
    %160 = vector.broadcast %cst_143 : f32 to vector<4x128xf32>
    %161 = arith.cmpf ogt, %159, %160 : vector<4x128xf32>
    %cst_144 = arith.constant 2.000000e-01 : f32
    %162 = vector.broadcast %cst_144 : f32 to vector<4x128xf32>
    %163 = arith.mulf %162, %159 : vector<4x128xf32>
    %164 = arith.select %161, %159, %163 : vector<4x128xi1>, vector<4x128xf32>
    %c0_145 = arith.constant 0 : index
    %c0_146 = arith.constant 0 : index
    %165 = vector.load %arg13[%c0_145, %c0_146] : memref<4x128xf32, #tpu.memory_space<vmem>>, vector<4x128xf32>
    tpu.vector_store %arg13[%c0_145, %c0_146], %164 {strides = array<i32>} : memref<4x128xf32, #tpu.memory_space<vmem>>, vector<4x128xf32>,
    return
  }
}

</mosaic_0001>

<bundles_post_ra>
// kernel: tile.23
= control target key start
LH: loop header
LB: loop body
LE: loop exit
PB: predicated region body
PF: predicated region fallthrough
CT: control target
= control target key end

     0   :  { %s28_s0 = inlined_call_operand.vmem [shape: f32[8], index: 0, kind: input, shape index: {}]   ;;  %s29_s1 = inlined_call_operand.vmem [shape: f32[16,8], index: 1, kind: output, shape index: {}]  }
   0x1   :  { %v4_v0 = vld [vmem:[%s28_s0] ss:$0 sm:$0xff] }
   0x2   :  { %5 = vst [vmem:[%s29_s1] sm:$0xff] %v4_v0 }
   0x3   :  { %8 = vst [vmem:[%s29_s1 + $0x8] sm:$0xff] %v4_v0 }

// kernel: tile.24
= control target key start
LH: loop header
LB: loop body
LE: loop exit
PB: predicated region body
PF: predicated region fallthrough
CT: control target
= control target key end

     0   :  { %s131_s10 = smov 120   ;;  %s132_s11 = smov 104   ;;  %vm3_vm0 = vcmask 64512   ;;  %vm9_vm1 = vcmask 1048512   ;;  %vm15_vm2 = vcmask 982912   ;;  %vm21_vm3 = vcmask 917312   ;;  %s207_s0 = inlined_call_operand.vmem [shape: f32[16,8], index: 0, kind: input, shape index: {}]   ;;  %s208_s1 = inlined_call_operand.vmem [shape: f32[1,128], index: 1, kind: output, shape index: {}]  }
   0x1   :  { %v101_v0 = vld [vmem:[%s207_s0 + $0xf] sm:$0x1]   ;;  %v103_v1 = vld [vmem:[%s207_s0 + $0xd] sm:$0x1]   ;;  %v105_v2 = vld [vmem:[%s207_s0 + $0xb] sm:$0x1]  }
   0x2   :  { %7 = vrot.lane.b32.xlu0 %v101_v0, %s131_s10  ;;  %19 = vrot.lane.b32.xlu1 %v103_v1, %s132_s11  ;;  %s133_s14 = smov 88   ;;  %v102_v3 = vld [vmem:[%s207_s0 + $0xe] sm:$0x1]   ;;  %v104_v4 = vld [vmem:[%s207_s0 + $0xc] sm:$0x1]   ;;  %s134_s19 = smov 112  }
   0x3   :  { %31 = vrot.lane.b32.xlu2 %v105_v2, %s133_s14  ;;  %s135_s20 = smov 96   ;;  %v106_v5 = vld [vmem:[%s207_s0 + $0xa] sm:$0x1]   ;;  %s136_s23 = smov 80   ;;  %v107_v6 = vld [vmem:[%s207_s0 + $0x9] sm:$0x1]  }
   0x4   :  { %v108_v7 = vld [vmem:[%s207_s0 + $0x8] sm:$0x1]   ;;  %s137_s28 = smov 72   ;;  %s138_s29 = smov 64   ;;  %v109_v8 = vld [vmem:[%s207_s0 + $0x7] sm:$0x1]  }
   0x5   :  { %s139_s3 = smov 56   ;;  %v110_v9 = vld [vmem:[%s207_s0 + $0x6] sm:$0x1]   ;;  %v111_v10 = vld [vmem:[%s207_s0 + $0x5] sm:$0x1]   ;;  %s140_s8 = smov 48  }
   0x6   :  { %s141_s9 = smov 40   ;;  %v112_v11 = vld [vmem:[%s207_s0 + $0x4] sm:$0x1]   ;;  %s142_s12 = smov 32   ;;  %v113_v12 = vld [vmem:[%s207_s0 + $0x3] sm:$0x1]  }
   0x7   :  { %v114_v13 = vld [vmem:[%s207_s0 + $0x2] sm:$0x1]   ;;  %s143_s17 = smov 24   ;;  %s144_s18 = smov 16   ;;  %v115_v14 = vld [vmem:[%s207_s0 + $0x1] sm:$0x1]  }
   0x8   :  { %s145_s21 = smov 8   ;;  %v2_v15 = vld [vmem:[%s207_s0] sm:$0x1]   ;;  %vm27_vm4 = vcmask 851712   ;;  %vm33_vm5 = vcmask 786112   ;;  %vm39_vm6 = vcmask 720512  }
   0x9   :  { %4 = vst.msk [vmem:[#allocation0] sm:$0x1] %vm3_vm0, %v2_v15   ;;  %vm45_vm7 = vcmask 654912   ;;  %vm51_vm8 = vcmask 589312   ;;  %vm57_vm9 = vcmask 523712   ;;  %vm63_vm10 = vcmask 458112  }
   0xa   :  { %13 = vrot.lane.b32.xlu0 %v102_v3, %s134_s19  ;;  %25 = vrot.lane.b32.xlu1 %v104_v4, %s135_s20  ;;  %vm69_vm11 = vcmask 392512   ;;  %vm75_vm12 = vcmask 326912   ;;  %vm81_vm13 = vcmask 261312   ;;  %vm87_vm14 = vcmask 195712  }
   0xb   :  { %37 = vrot.lane.b32.xlu2 %v106_v5, %s136_s23  ;;  %vm93_vm15 = vcmask 130112  }
  0x12   :  { %43 = vrot.lane.b32.xlu0 %v107_v6, %s137_s28  ;;  %49 = vrot.lane.b32.xlu1 %v108_v7, %s138_s29 }
  0x13   :  { %55 = vrot.lane.b32.xlu2 %v109_v8, %s139_s3 }
  0x1a   :  { %61 = vrot.lane.b32.xlu0 %v110_v9, %s140_s8  ;;  %67 = vrot.lane.b32.xlu1 %v111_v10, %s141_s9 }
  0x1b   :  { %73 = vrot.lane.b32.xlu2 %v112_v11, %s142_s12 }
  0x22   :  { %79 = vrot.lane.b32.xlu0 %v113_v12, %s143_s17  ;;  %85 = vrot.lane.b32.xlu1 %v114_v13, %s144_s18 }
  0x23   :  { %91 = vrot.lane.b32.xlu2 %v115_v14, %s145_s21 }
  0x5d   :  { %v32_v16 = vpop.permute.xlu2 %31  }
  0x65   :  { %v38_v17 = vpop.permute.xlu2 %37  }
  0x6d   :  { %v56_v18 = vpop.permute.xlu2 %55  }
  0x74   :  { %v8_v19 = vpop.permute.xlu0 %7   ;;  %v20_v20 = vpop.permute.xlu1 %19  }
  0x75   :  { %10 = vst.msk [vmem:[#allocation0] sm:$0x1] %vm9_vm1, %v8_v19   ;;  %v74_v21 = vpop.permute.xlu2 %73  }
  0x7c   :  { %v14_v22 = vpop.permute.xlu0 %13   ;;  %v26_v23 = vpop.permute.xlu1 %25  }
  0x7d   :  { %16 = vst.msk [vmem:[#allocation0] sm:$0x1] %vm15_vm2, %v14_v22   ;;  %v92_v24 = vpop.permute.xlu2 %91  }
  0x7e   :  { %22 = vst.msk [vmem:[#allocation0] sm:$0x1] %vm21_vm3, %v20_v20  }
  0x7f   :  { %28 = vst.msk [vmem:[#allocation0] sm:$0x1] %vm27_vm4, %v26_v23  }
  0x80   :  { %34 = vst.msk [vmem:[#allocation0] sm:$0x1] %vm33_vm5, %v32_v16  }
  0x81   :  { %40 = vst.msk [vmem:[#allocation0] sm:$0x1] %vm39_vm6, %v38_v17  }
  0x84   :  { %v44_v25 = vpop.permute.xlu0 %43   ;;  %v50_v26 = vpop.permute.xlu1 %49  }
  0x85   :  { %46 = vst.msk [vmem:[#allocation0] sm:$0x1] %vm45_vm7, %v44_v25  }
  0x86   :  { %52 = vst.msk [vmem:[#allocation0] sm:$0x1] %vm51_vm8, %v50_v26  }
  0x87   :  { %58 = vst.msk [vmem:[#allocation0] sm:$0x1] %vm57_vm9, %v56_v18  }
  0x8c   :  { %v62_v27 = vpop.permute.xlu0 %61   ;;  %v68_v28 = vpop.permute.xlu1 %67  }
  0x8d   :  { %64 = vst.msk [vmem:[#allocation0] sm:$0x1] %vm63_vm10, %v62_v27  }
  0x8e   :  { %70 = vst.msk [vmem:[#allocation0] sm:$0x1] %vm69_vm11, %v68_v28  }
  0x8f   :  { %76 = vst.msk [vmem:[#allocation0] sm:$0x1] %vm75_vm12, %v74_v21  }
  0x94   :  { %v80_v29 = vpop.permute.xlu0 %79   ;;  %v86_v30 = vpop.permute.xlu1 %85  }
  0x95   :  { %82 = vst.msk [vmem:[#allocation0] sm:$0x1] %vm81_vm13, %v80_v29  }
  0x96   :  { %88 = vst.msk [vmem:[#allocation0] sm:$0x1] %vm87_vm14, %v86_v30  }
  0x97   :  { %94 = vst.msk [vmem:[#allocation0] sm:$0x1] %vm93_vm15, %v92_v24  }
  0x9e   :  { %v97_v31 = vld [vmem:[#allocation0] sm:$0x1] }
  0x9f   :  { %100 = vst [vmem:[%s208_s1] sm:$0x1] %v97_v31 }

// kernel: tile.28
= control target key start
LH: loop header
LB: loop body
LE: loop exit
PB: predicated region body
PF: predicated region fallthrough
CT: control target
= control target key end

     0   :  { %s22_s0 = inlined_call_operand.vmem [shape: f32[16], index: 0, kind: input, shape index: {}]   ;;  %s23_s1 = inlined_call_operand.vmem [shape: f32[8,16], index: 1, kind: output, shape index: {}]  }
   0x1   :  { %v4_v0 = vld [vmem:[%s22_s0] ss:$0 sm:$0xff] }
   0x2   :  { %5 = vst [vmem:[%s23_s1] sm:$0xff] %v4_v0 }

// kernel: tile.29
= control target key start
LH: loop header
LB: loop body
LE: loop exit
PB: predicated region body
PF: predicated region fallthrough
CT: control target
= control target key end

     0   :  { %s67_s10 = smov 112   ;;  %s68_s11 = smov 80   ;;  %vm3_vm0 = vcmask 130048   ;;  %vm9_vm1 = vcmask 1048448   ;;  %vm15_vm2 = vcmask 917248   ;;  %vm21_vm3 = vcmask 786048   ;;  %s111_s0 = inlined_call_operand.vmem [shape: f32[8,16], index: 0, kind: input, shape index: {}]   ;;  %s112_s1 = inlined_call_operand.vmem [shape: f32[1,128], index: 1, kind: output, shape index: {}]  }
   0x1   :  { %v53_v0 = vld [vmem:[%s111_s0 + $0x7] sm:$0x1]   ;;  %v55_v1 = vld [vmem:[%s111_s0 + $0x5] sm:$0x1]   ;;  %v57_v2 = vld [vmem:[%s111_s0 + $0x3] sm:$0x1]  }
   0x2   :  { %7 = vrot.lane.b32.xlu0 %v53_v0, %s67_s10  ;;  %19 = vrot.lane.b32.xlu1 %v55_v1, %s68_s11  ;;  %s69_s14 = smov 48   ;;  %v54_v3 = vld [vmem:[%s111_s0 + $0x6] sm:$0x1]   ;;  %v56_v4 = vld [vmem:[%s111_s0 + $0x4] sm:$0x1]   ;;  %s70_s21 = smov 96  }
   0x3   :  { %31 = vrot.lane.b32.xlu2 %v57_v2, %s69_s14  ;;  %v58_v5 = vld [vmem:[%s111_s0 + $0x2] sm:$0x1]   ;;  %s71_s22 = smov 64   ;;  %s72_s23 = smov 32   ;;  %v59_v6 = vld [vmem:[%s111_s0 + $0x1] sm:$0x1]  }
   0x4   :  { %s73_s26 = smov 16   ;;  %v2_v7 = vld [vmem:[%s111_s0] sm:$0x1]   ;;  %vm27_vm4 = vcmask 654848   ;;  %vm33_vm5 = vcmask 523648   ;;  %vm39_vm6 = vcmask 392448  }
   0x5   :  { %4 = vst.msk [vmem:[#allocation0] sm:$0x1] %vm3_vm0, %v2_v7   ;;  %vm45_vm7 = vcmask 261248  }
   0xa   :  { %13 = vrot.lane.b32.xlu0 %v54_v3, %s70_s21  ;;  %25 = vrot.lane.b32.xlu1 %v56_v4, %s71_s22 }
   0xb   :  { %37 = vrot.lane.b32.xlu2 %v58_v5, %s72_s23 }
  0x12   :  { %43 = vrot.lane.b32.xlu0 %v59_v6, %s73_s26 }
  0x5d   :  { %v32_v8 = vpop.permute.xlu2 %31  }
  0x65   :  { %v38_v9 = vpop.permute.xlu2 %37  }
  0x74   :  { %v8_v10 = vpop.permute.xlu0 %7   ;;  %v20_v11 = vpop.permute.xlu1 %19  }
  0x75   :  { %10 = vst.msk [vmem:[#allocation0] sm:$0x1] %vm9_vm1, %v8_v10  }
  0x7c   :  { %v14_v12 = vpop.permute.xlu0 %13   ;;  %v26_v13 = vpop.permute.xlu1 %25  }
  0x7d   :  { %16 = vst.msk [vmem:[#allocation0] sm:$0x1] %vm15_vm2, %v14_v12  }
  0x7e   :  { %22 = vst.msk [vmem:[#allocation0] sm:$0x1] %vm21_vm3, %v20_v11  }
  0x7f   :  { %28 = vst.msk [vmem:[#allocation0] sm:$0x1] %vm27_vm4, %v26_v13  }
  0x80   :  { %34 = vst.msk [vmem:[#allocation0] sm:$0x1] %vm33_vm5, %v32_v8  }
  0x81   :  { %40 = vst.msk [vmem:[#allocation0] sm:$0x1] %vm39_vm6, %v38_v9  }
  0x84   :  { %v44_v14 = vpop.permute.xlu0 %43  }
  0x85   :  { %46 = vst.msk [vmem:[#allocation0] sm:$0x1] %vm45_vm7, %v44_v14  }
  0x8c   :  { %v49_v15 = vld [vmem:[#allocation0] sm:$0x1] }
  0x8d   :  { %52 = vst [vmem:[%s112_s1] sm:$0x1] %v49_v15 }

// kernel: tile.33
= control target key start
LH: loop header
LB: loop body
LE: loop exit
PB: predicated region body
PF: predicated region fallthrough
CT: control target
= control target key end

     0   :  { %s22_s0 = inlined_call_operand.vmem [shape: f32[32], index: 0, kind: input, shape index: {}]   ;;  %s23_s1 = inlined_call_operand.vmem [shape: f32[4,32], index: 1, kind: output, shape index: {}]  }
   0x1   :  { %v4_v0 = vld [vmem:[%s22_s0] ss:$0 sm:$0xff] }
   0x2   :  { %5 = vst [vmem:[%s23_s1] sm:$0xf] %v4_v0 }

// kernel: tile.34
= control target key start
LH: loop header
LB: loop body
LE: loop exit
PB: predicated region body
PF: predicated region fallthrough
CT: control target
= control target key end

     0   :  { %s37_s8 = smov 32   ;;  %s38_s9 = smov 64   ;;  %vm7_vm0 = vcmask 261120   ;;  %vm13_vm1 = vcmask 1048320   ;;  %vm19_vm2 = vcmask 785920   ;;  %vm25_vm3 = vcmask 523520   ;;  %s55_s0 = inlined_call_operand.vmem [shape: f32[4,32], index: 0, kind: input, shape index: {}]   ;;  %s56_s1 = inlined_call_operand.vmem [shape: f32[1,128], index: 1, kind: output, shape index: {}]  }
   0x1   :  { %v4_v0 = vld [vmem:[%s55_s0] sm:$0xf]  ;;  %s36_s0 = smov 96  }
   0x2   :  { %5 = vst [vmem:[#allocation1] sm:$0xf] %v4_v0 }
   0x9   :  { %v10_v1 = vld [vmem:[#allocation1 + $0x3] sm:$0x1]   ;;  %v22_v2 = vld [vmem:[#allocation1 + $0x1] sm:$0x1]   ;;  %v16_v3 = vld [vmem:[#allocation1 + $0x2] sm:$0x1]  }
   0xa   :  { %11 = vrot.lane.b32.xlu0 %v10_v1, %s36_s0  ;;  %23 = vrot.lane.b32.xlu1 %v22_v2, %s37_s8  ;;  %v6_v4 = vld [vmem:[#allocation1] sm:$0x1]  }
   0xb   :  { %8 = vst.msk [vmem:[#allocation0] sm:$0x1] %vm7_vm0, %v6_v4  }
  0x12   :  { %17 = vrot.lane.b32.xlu0 %v16_v3, %s38_s9 }
  0x7c   :  { %v12_v5 = vpop.permute.xlu0 %11   ;;  %v24_v6 = vpop.permute.xlu1 %23  }
  0x7d   :  { %14 = vst.msk [vmem:[#allocation0] sm:$0x1] %vm13_vm1, %v12_v5  }
  0x84   :  { %v18_v7 = vpop.permute.xlu0 %17  }
  0x85   :  { %20 = vst.msk [vmem:[#allocation0] sm:$0x1] %vm19_vm2, %v18_v7  }
  0x86   :  { %26 = vst.msk [vmem:[#allocation0] sm:$0x1] %vm25_vm3, %v24_v6  }
  0x8d   :  { %v29_v8 = vld [vmem:[#allocation0] sm:$0x1] }
  0x8e   :  { %32 = vst [vmem:[%s56_s1] sm:$0x1] %v29_v8 }

// kernel: tile.38
= control target key start
LH: loop header
LB: loop body
LE: loop exit
PB: predicated region body
PF: predicated region fallthrough
CT: control target
= control target key end

     0   :  { %s22_s0 = inlined_call_operand.vmem [shape: f32[64], index: 0, kind: input, shape index: {}]   ;;  %s23_s1 = inlined_call_operand.vmem [shape: f32[2,64], index: 1, kind: output, shape index: {}]  }
   0x1   :  { %v4_v0 = vld [vmem:[%s22_s0] ss:$0 sm:$0xff] }
   0x2   :  { %5 = vst [vmem:[%s23_s1] sm:$0x3] %v4_v0 }

// kernel: tile.39
= control target key start
LH: loop header
LB: loop body
LE: loop exit
PB: predicated region body
PF: predicated region fallthrough
CT: control target
= control target key end

     0   :  { %vm7_vm0 = vcmask 523264   ;;  %vm13_vm1 = vcmask 1048064   ;;  %s39_s0 = inlined_call_operand.vmem [shape: f32[2,64], index: 0, kind: input, shape index: {}]   ;;  %s40_s1 = inlined_call_operand.vmem [shape: f32[1,128], index: 1, kind: output, shape index: {}]  }
   0x1   :  { %v4_v0 = vld [vmem:[%s39_s0] sm:$0x3]  ;;  %s22_s0 = smov 64  }
   0x2   :  { %5 = vst [vmem:[#allocation1] sm:$0x3] %v4_v0 }
   0x9   :  { %v10_v1 = vld [vmem:[#allocation1 + $0x1] sm:$0x1]   ;;  %v6_v2 = vld [vmem:[#allocation1] sm:$0x1]  }
   0xa   :  { %11 = vrot.lane.b32.xlu0 %v10_v1, %s22_s0  ;;  %8 = vst.msk [vmem:[#allocation0] sm:$0x1] %vm7_vm0, %v6_v2  }
  0x7c   :  { %v12_v3 = vpop.permute.xlu0 %11  }
  0x7d   :  { %14 = vst.msk [vmem:[#allocation0] sm:$0x1] %vm13_vm1, %v12_v3  }
  0x84   :  { %v17_v4 = vld [vmem:[#allocation0] sm:$0x1] }
  0x85   :  { %20 = vst [vmem:[%s40_s1] sm:$0x1] %v17_v4 }

// kernel: d_net64_forward.1
= control target key start
LH: loop header
LB: loop body
LE: loop exit
PB: predicated region body
PF: predicated region fallthrough
CT: control target
= control target key end

     0   :  { %vm57_vm0 = vcmask 523264   ;;  %vm210_vm1 = vcmask 785408   ;;  %vm571_vm6 = vcmask 261120   ;;  %vm1033_vm9 = vcmask 130048   ;;  %s3404_s0 = inlined_call_operand.vmem [shape: f32[64,96], index: 0, kind: input, shape index: {}]   ;;  %s3405_s2 = inlined_call_operand.vmem [shape: f32[4,32,64], index: 2, kind: input, shape index: {}]   ;;  %s3406_s1 = inlined_call_operand.vmem [shape: bf16[4,96,128], index: 1, kind: input, shape index: {}]   ;;  %s3407_s3 = inlined_call_operand.vmem [shape: f32[1,128], index: 3, kind: input, shape index: {}]   ;;  %s3408_s4 = inlined_call_operand.vmem [shape: bf16[4,128,128], index: 4, kind: input, shape index: {}]   ;;  %s3409_s5 = inlined_call_operand.vmem [shape: f32[4,16,32], index: 5, kind: input, shape index: {}]   ;;  %s3410_s6 = inlined_call_operand.vmem [shape: f32[1,128], index: 6, kind: input, shape index: {}]   ;;  %s3411_s7 = inlined_call_operand.vmem [shape: bf16[4,128,128], index: 7, kind: input, shape index: {}]   ;;  %s3412_s8 = inlined_call_operand.vmem [shape: f32[4,8,16], index: 8, kind: input, shape index: {}]   ;;  %s3413_s9 = inlined_call_operand.vmem [shape: f32[1,128], index: 9, kind: input, shape index: {}]   ;;  %s3414_s10 = inlined_call_operand.vmem [shape: bf16[4,128,128], index: 10, kind: input, shape index: {}]   ;;  %s3415_s11 = inlined_call_operand.vmem [shape: f32[4,4,8], index: 11, kind: input, shape index: {}]   ;;  %s3416_s12 = inlined_call_operand.vmem [shape: f32[1,128], index: 12, kind: input, shape index: {}]   ;;  %s3417_s13 = inlined_call_operand.vmem [shape: f32[4,128], index: 13, kind: output, shape index: {}]  }
   0x1   :  { %v2816_v0 = vld [vmem:[%s3404_s0 + $0x38] sm:$0xff]  ;;  %v2821_v1 = vld [vmem:[%s3404_s0 + $0x30] sm:$0xff]  ;;  %v2828_v2 = vld [vmem:[%s3404_s0 + $0x28] sm:$0xff]  ;;  %vm1458_vm11 = vcmask 64512  }
   0x2   :  { %78 = vmatpush.msra.mxu0 %v2816_v0  ;;  %138 = vmatpush.msra.mxu1 %v2816_v0  ;;  %v2836_v3 = vld [vmem:[%s3404_s0 + $0x20] sm:$0xff]  ;;  %v2844_v4 = vld [vmem:[%s3404_s0 + $0x18] sm:$0xff]  ;;  %v2852_v5 = vld [vmem:[%s3404_s0 + $0x10] sm:$0xff] }
   0x3   :  { %2731 = vmatpush.msra.mxu2 %v2816_v0  ;;  %v2860_v6 = vld [vmem:[%s3404_s0 + $0x8] sm:$0xff]  ;;  %v2868_v7 = vld [vmem:[%s3404_s0] sm:$0xff]  ;;  %v1894_v10 = vld [vmem:[%s3405_s2 + $0x38] sm:$0xff] }
   0x4   :  { %79 = vmatpush.msra.mxu0 %v2821_v1  ;;  %139 = vmatpush.msra.mxu1 %v2821_v1  ;;  %v53_v8 = vld [vmem:[%s3405_s2] sm:$0xff]  ;;  %v54_v11 = vld [vmem:[%s3405_s2 + $0x8] sm:$0xff]  ;;  %v55_v13 = vld [vmem:[%s3405_s2 + $0x10] sm:$0xff] }
   0x5   :  { %2732 = vmatpush.msra.mxu2 %v2821_v1  ;;  %v1891_v9 = vld [vmem:[%s3405_s2 + $0x20] sm:$0xff]  ;;  %v1892_v12 = vld [vmem:[%s3405_s2 + $0x28] sm:$0xff]  ;;  %v1893_v14 = vld [vmem:[%s3405_s2 + $0x30] sm:$0xff] }
   0x6   :  { %80 = vmatpush.msra.mxu0 %v2828_v2  ;;  %140 = vmatpush.msra.mxu1 %v2828_v2  ;;  %v56_v15 = vld [vmem:[%s3405_s2 + $0x18] sm:$0xff]  ;;  %v2616_v17 = vld [vmem:[%s3406_s1 + $0x28] sm:$0xff]  ;;  %v2621_v18 = vld [vmem:[%s3406_s1 + $0x50] sm:$0xff] }
   0x7   :  { %2733 = vmatpush.msra.mxu2 %v2828_v2  ;;  %v2622_v16 = vld [vmem:[%s3406_s1 + $0x58] sm:$0xff]  ;;  %280 = vmatpush.bf16.msra.mxu3 %v2616_v17  ;;  %v2615_v19 = vld [vmem:[%s3406_s1 + $0x20] sm:$0xff]  ;;  %v2620_v21 = vld [vmem:[%s3406_s1 + $0x48] sm:$0xff] }
   0x8   :  { %81 = vmatpush.msra.mxu0 %v2836_v3  ;;  %141 = vmatpush.msra.mxu1 %v2836_v3  ;;  %v1963_v20 = vld [vmem:[%s3405_s2 + $0x40] sm:$0xff]  ;;  %v2614_v22 = vld [vmem:[%s3406_s1 + $0x18] sm:$0xff]  ;;  %v1964_v23 = vld [vmem:[%s3405_s2 + $0x48] sm:$0xff] }
   0x9   :  { %2734 = vmatpush.msra.mxu2 %v2836_v3  ;;  %v1965_v24 = vld [vmem:[%s3405_s2 + $0x50] sm:$0xff]  ;;  %v1966_v25 = vld [vmem:[%s3405_s2 + $0x58] sm:$0xff]  ;;  %v2619_v26 = vld [vmem:[%s3406_s1 + $0x40] sm:$0xff] }
   0xa   :  { %82 = vmatpush.msra.mxu0 %v2844_v4  ;;  %142 = vmatpush.msra.mxu1 %v2844_v4  ;;  %v2613_v27 = vld [vmem:[%s3406_s1 + $0x10] sm:$0xff]  ;;  %v2618_v28 = vld [vmem:[%s3406_s1 + $0x38] sm:$0xff]  ;;  %v2612_v29 = vld [vmem:[%s3406_s1 + $0x8] sm:$0xff] }
   0xb   :  { %2735 = vmatpush.msra.mxu2 %v2844_v4  ;;  %281 = vmatpush.bf16.msra.mxu3 %v2615_v19  ;;  %v2617_v30 = vld [vmem:[%s3406_s1 + $0x30] sm:$0xff]  ;;  %v2611_v31 = vld [vmem:[%s3406_s1] sm:$0xff]  ;;  %v2628_v32 = vld [vmem:[%s3406_s1 + $0x88] sm:$0xff] }
   0xc   :  { %83 = vmatpush.msra.mxu0 %v2852_v5  ;;  %143 = vmatpush.msra.mxu1 %v2852_v5  ;;  %v2627_v33 = vld [vmem:[%s3406_s1 + $0x80] sm:$0xff]  ;;  %v2626_v34 = vld [vmem:[%s3406_s1 + $0x78] sm:$0xff]  ;;  %v2625_v35 = vld [vmem:[%s3406_s1 + $0x70] sm:$0xff] }
   0xd   :  { %2736 = vmatpush.msra.mxu2 %v2852_v5  ;;  %v2624_v38 = vld [vmem:[%s3406_s1 + $0x68] sm:$0xff]  ;;  %v2623_v39 = vld [vmem:[%s3406_s1 + $0x60] sm:$0xff]  ;;  %v2011_v57 = vld [vmem:[%s3405_s2 + $0x70] sm:$0xff] }
   0xe   :  { %84 = vmatpush.msra.mxu0 %v2860_v6  ;;  %144 = vmatpush.msra.mxu1 %v2860_v6  ;;  %v2009_v52 = vld [vmem:[%s3405_s2 + $0x60] sm:$0xff]  ;;  %v2010_v55 = vld [vmem:[%s3405_s2 + $0x68] sm:$0xff]  ;;  %v2012_v59 = vld [vmem:[%s3405_s2 + $0x78] sm:$0xff] }
   0xf   :  { %2737 = vmatpush.msra.mxu2 %v2860_v6  ;;  %282 = vmatpush.bf16.msra.mxu3 %v2614_v22  ;;  %v2634_v60 = vld [vmem:[%s3406_s1 + $0xb8] sm:$0xff]  ;;  %v2633_v61 = vld [vmem:[%s3406_s1 + $0xb0] sm:$0xff]  ;;  %v2632_v62 = vld [vmem:[%s3406_s1 + $0xa8] sm:$0xff] }
  0x10   :  { %85 = vmatpush.msra.mxu0 %v2868_v7  ;;  %145 = vmatpush.msra.mxu1 %v2868_v7  ;;  %v2631_v63 = vld [vmem:[%s3406_s1 + $0xa0] sm:$0xff]  ;;  %v2646_v19 = vld [vmem:[%s3408_s4 + $0x58] sm:$0xff] }
  0x11   :  { %1887 = vmatmul.msk.f32.vlgmr.msra.gmra.mxu0 %vm57_vm0, %v53_v8  ;;  %1895 = vmatmul.msk.f32.vlgmr.msra.gmra.mxu1 %vm57_vm0, %v1891_v9  ;;  %v2647_v17 = vld [vmem:[%s3408_s4 + $0x60] sm:$0xff] }
  0x12   :  { %2738 = vmatpush.msra.mxu2 %v2868_v7  ;;  %322 = vmatpush.msrb.mxu0 %v2816_v0 }
  0x13   :  { %1898 = vmatmul.msk.f32.vlgmr.msra.gmra.mxu2 %vm57_vm0, %v1894_v10  ;;  %283 = vmatpush.bf16.msra.mxu3 %v2613_v27 }
  0x14   :  { %323 = vmatpush.msrb.mxu0 %v2821_v1  ;;  %219 = vmatpush.bf16.msrb.mxu2 %v2622_v16  ;;  %v2648_v16 = vld [vmem:[%s3408_s4 + $0x68] sm:$0xff] }
  0x15   :  { %402 = vmatpush.bf16.msrb.mxu1 %v2628_v32 }
  0x16   :  { %324 = vmatpush.msrb.mxu0 %v2828_v2 }
  0x17   :  { %284 = vmatpush.bf16.msra.mxu3 %v2612_v29 }
  0x18   :  { %325 = vmatpush.msrb.mxu0 %v2836_v3  ;;  %220 = vmatpush.bf16.msrb.mxu2 %v2621_v18 }
  0x19   :  { %1888 = vmatmul.msk.f32.gmra.mxu0 %vm57_vm0, %v54_v11  ;;  %1896 = vmatmul.msk.f32.gmra.mxu1 %vm57_vm0, %v1892_v12 }
  0x1a   :  { %326 = vmatpush.msrb.mxu0 %v2844_v4  ;;  %403 = vmatpush.bf16.msrb.mxu1 %v2627_v33 }
  0x1b   :  { %285 = vmatpush.bf16.msra.mxu3 %v2611_v31 }
  0x1c   :  { %327 = vmatpush.msrb.mxu0 %v2852_v5  ;;  %221 = vmatpush.bf16.msrb.mxu2 %v2620_v21 }
  0x1e   :  { %328 = vmatpush.msrb.mxu0 %v2860_v6  ;;  %404 = vmatpush.bf16.msrb.mxu1 %v2626_v34 }
  0x1f   :  { %528 = vmatpush.bf16.msrb.mxu3 %v2634_v60  ;;  %v2057_v60 = vld [vmem:[%s3409_s5 + $0x10] sm:$0xff] }
  0x20   :  { %329 = vmatpush.msrb.mxu0 %v2868_v7  ;;  %222 = vmatpush.bf16.msrb.mxu2 %v2619_v26 }
  0x21   :  { %1889 = vmatmul.msk.f32.gmra.mxu0 %vm57_vm0, %v55_v13  ;;  %1897 = vmatmul.msk.f32.gmra.mxu1 %vm57_vm0, %v1893_v14  ;;  %v2650_v13 = vld [vmem:[%s3408_s4 + $0x78] sm:$0xff] }
  0x22   :  { %405 = vmatpush.bf16.msrb.mxu1 %v2625_v35 }
  0x23   :  { %529 = vmatpush.bf16.msrb.mxu3 %v2633_v61  ;;  %v2640_v61 = vld [vmem:[%s3408_s4 + $0x28] sm:$0xff] }
  0x24   :  { %223 = vmatpush.bf16.msrb.mxu2 %v2618_v28 }
  0x26   :  { %406 = vmatpush.bf16.msrb.mxu1 %v2624_v38 }
  0x27   :  { %530 = vmatpush.bf16.msrb.mxu3 %v2632_v62  ;;  %v2658_v62 = vld [vmem:[%s3408_s4 + $0xb8] sm:$0xff] }
  0x28   :  { %224 = vmatpush.bf16.msrb.mxu2 %v2617_v30 }
  0x29   :  { %1890 = vmatmul.msk.f32.gmra.mxu0 %vm57_vm0, %v56_v15  ;;  %v2649_v15 = vld [vmem:[%s3408_s4 + $0x70] sm:$0xff] }
  0x2a   :  { %407 = vmatpush.bf16.msrb.mxu1 %v2623_v39 }
  0x2b   :  { %531 = vmatpush.bf16.msrb.mxu3 %v2631_v63  ;;  %v2639_v63 = vld [vmem:[%s3408_s4 + $0x20] sm:$0xff] }
  0x2c   :  { %448 = vmatpush.msra.mxu2 %v2816_v0 }
  0x2e   :  { %449 = vmatpush.msra.mxu2 %v2821_v1  ;;  %v2630_v1 = vld [vmem:[%s3406_s1 + $0x98] sm:$0xff] }
  0x2f   :  { %532 = vmatpush.bf16.msrb.mxu3 %v2630_v1  ;;  %v2058_v1 = vld [vmem:[%s3409_s5 + $0x18] sm:$0xff] }
  0x30   :  { %450 = vmatpush.msra.mxu2 %v2828_v2  ;;  %v2629_v2 = vld [vmem:[%s3406_s1 + $0x90] sm:$0xff] }
  0x31   :  { %1967 = vmatmul.msk.f32.vlgmr.msrb.gmra.mxu0 %vm57_vm0, %v1963_v20  ;;  %v2645_v20 = vld [vmem:[%s3408_s4 + $0x50] sm:$0xff] }
  0x32   :  { %451 = vmatpush.msra.mxu2 %v2836_v3 }
  0x33   :  { %533 = vmatpush.bf16.msrb.mxu3 %v2629_v2  ;;  %v2638_v2 = vld [vmem:[%s3408_s4 + $0x18] sm:$0xff] }
  0x34   :  { %452 = vmatpush.msra.mxu2 %v2844_v4 }
  0x36   :  { %453 = vmatpush.msra.mxu2 %v2852_v5 }
  0x38   :  { %454 = vmatpush.msra.mxu2 %v2860_v6 }
  0x39   :  { %1968 = vmatmul.msk.f32.gmra.mxu0 %vm57_vm0, %v1964_v23  ;;  %v2644_v23 = vld [vmem:[%s3408_s4 + $0x48] sm:$0xff] }
  0x3a   :  { %455 = vmatpush.msra.mxu2 %v2868_v7 }
  0x41   :  { %1969 = vmatmul.msk.f32.gmra.mxu0 %vm57_vm0, %v1965_v24  ;;  %v2643_v24 = vld [vmem:[%s3408_s4 + $0x40] sm:$0xff] }
  0x49   :  { %1970 = vmatmul.msk.f32.gmra.mxu0 %vm57_vm0, %v1966_v25 }
  0x8e   :  { %v87_v36 = vpop.f32.mrf.mxu0  ;;  %v147_v37 = vpop.f32.mrf.mxu1 }
  0x96   :  { %v90_v40 = vpop.f32.mrf.mxu0  ;;  %v150_v41 = vpop.f32.mrf.mxu1 }
  0x97   :  { %v99_v42 = vpack.c.bf16 %v90_v40, %v87_v36  ;;  %v159_v43 = vpack.c.bf16 %v150_v41, %v147_v37  ;;  %v156_v46 = vpop.f32.mrf.mxu2  ;;  %v2739_v40 = vld [vmem:[%s3407_s3] ss:$0 sm:$0xff] }
  0x99   :  { %1935 = vmatmul.msk.bf16.vlgmr.msrb.gmra.mxu2 %vm210_vm1, %v159_v43  ;;  %1961 = vmatmul.msk.bf16.vlgmr.msra.gmra.mxu3 %vm210_vm1, %v99_v42 }
  0x9a   :  { %716 = vmatpush.bf16.msrb.mxu2 %v2650_v13  ;;  %v2652_v13 = vld [vmem:[%s3408_s4 + $0x88] sm:$0xff] }
  0x9e   :  { %v93_v44 = vpop.f32.mrf.mxu0  ;;  %v153_v45 = vpop.f32.mrf.mxu1  ;;  %717 = vmatpush.bf16.msrb.mxu2 %v2649_v15 }
  0x9f   :  { %v160_v47 = vpack.c.bf16 %v156_v46, %v153_v45 }
  0xa2   :  { %718 = vmatpush.bf16.msrb.mxu2 %v2648_v16 }
  0xa6   :  { %v96_v48 = vpop.f32.mrf.mxu0  ;;  %719 = vmatpush.bf16.msrb.mxu2 %v2647_v17  ;;  %v2666_v17 = vld [vmem:[%s3408_s4 + $0xf8] sm:$0xff] }
  0xa7   :  { %v100_v49 = vpack.c.bf16 %v96_v48, %v93_v44 }
  0xa9   :  { %1936 = vmatmul.msk.bf16.gmra.mxu2 %vm210_vm1, %v160_v47  ;;  %1962 = vmatmul.msk.bf16.gmra.mxu3 %vm210_vm1, %v100_v49 }
  0xaa   :  { %720 = vmatpush.bf16.msrb.mxu2 %v2646_v19 }
  0xae   :  { %v331_v50 = vpop.f32.mrf.mxu0  ;;  %721 = vmatpush.bf16.msrb.mxu2 %v2645_v20 }
  0xb2   :  { %722 = vmatpush.bf16.msrb.mxu2 %v2644_v23 }
  0xb6   :  { %v334_v51 = vpop.f32.mrf.mxu0  ;;  %723 = vmatpush.bf16.msrb.mxu2 %v2643_v24 }
  0xb7   :  { %v343_v53 = vpack.c.bf16 %v334_v51, %v331_v50 }
  0xb9   :  { %2007 = vmatmul.msk.bf16.vlgmr.msrb.gmra.mxu1 %vm210_vm1, %v343_v53  ;;  %2013 = vmatmul.msk.f32.vlgmr.msra.gmra.mxu2 %vm57_vm0, %v2009_v52  ;;  %v2642_v53 = vld [vmem:[%s3408_s4 + $0x38] sm:$0xff] }
  0xba   :  { %778 = vmatpush.bf16.msra.mxu3 %v2642_v53 }
  0xbe   :  { %v337_v54 = vpop.f32.mrf.mxu0 }
  0xc1   :  { %2014 = vmatmul.msk.f32.gmra.mxu2 %vm57_vm0, %v2010_v55 }
  0xc6   :  { %v340_v56 = vpop.f32.mrf.mxu0 }
  0xc7   :  { %v344_v58 = vpack.c.bf16 %v340_v56, %v337_v54  ;;  %v2641_v56 = vld [vmem:[%s3408_s4 + $0x30] sm:$0xff] }
  0xc8   :  { %779 = vmatpush.bf16.msra.mxu3 %v2641_v56 }
  0xc9   :  { %2008 = vmatmul.msk.bf16.gmra.mxu1 %vm210_vm1, %v344_v58  ;;  %2015 = vmatmul.msk.f32.gmra.mxu2 %vm57_vm0, %v2011_v57  ;;  %v569_v58 = vld [vmem:[%s3409_s5] sm:$0xff] }
  0xcc   :  { %780 = vmatpush.bf16.msra.mxu3 %v2640_v61 }
  0xd0   :  { %781 = vmatpush.bf16.msra.mxu3 %v2639_v63  ;;  %v1032_v63 = vld [vmem:[%s3412_s8] sm:$0xff] }
  0xd1   :  { %2016 = vmatmul.msk.f32.gmra.mxu2 %vm57_vm0, %v2012_v59 }
  0xd4   :  { %782 = vmatpush.bf16.msra.mxu3 %v2638_v2  ;;  %v2680_v2 = vld [vmem:[%s3411_s7 + $0x68] sm:$0xff] }
 0x11c   :  { %v226_v0 = vpop.f32.mrf.mxu2  ;;  %v287_v12 = vpop.f32.mrf.mxu3 }
 0x11d   :  { %v288_v34 = vadd.f32 %v287_v12, %v226_v0  ;;  %v570_v0 = vld [vmem:[%s3409_s5 + $0x8] sm:$0xff]  ;;  %v2653_v12 = vld [vmem:[%s3408_s4 + $0x90] sm:$0xff] }
 0x124   :  { %v228_v3 = vpop.f32.mrf.mxu2  ;;  %v289_v14 = vpop.f32.mrf.mxu3 }
 0x125   :  { %v290_v31 = vadd.f32 %v289_v14, %v228_v3  ;;  %v2141_v3 = vld [vmem:[%s3409_s5 + $0x20] sm:$0xff] }
 0x126   :  { %v2651_v14 = vld [vmem:[%s3408_s4 + $0x80] sm:$0xff] }
 0x12c   :  { %v231_v4 = vpop.f32.mrf.mxu2  ;;  %v292_v18 = vpop.f32.mrf.mxu3 }
 0x12d   :  { %v293_v30 = vadd.f32 %v292_v18, %v231_v4  ;;  %v2142_v4 = vld [vmem:[%s3409_s5 + $0x28] sm:$0xff] }
 0x134   :  { %v233_v5 = vpop.f32.mrf.mxu2  ;;  %v294_v22 = vpop.f32.mrf.mxu3 }
 0x135   :  { %v295_v35 = vadd.f32 %v294_v22, %v233_v5  ;;  %v2637_v5 = vld [vmem:[%s3408_s4 + $0x10] sm:$0xff] }
 0x136   :  { %v409_v21 = vpop.f32.mrf.mxu1  ;;  %783 = vmatpush.bf16.msra.mxu3 %v2637_v5  ;;  %v2679_v5 = vld [vmem:[%s3411_s7 + $0x60] sm:$0xff] }
 0x137   :  { %v419_v38 = vadd.f32 %v409_v21, %v288_v34 }
 0x13c   :  { %v457_v6 = vpop.f32.mrf.mxu2 }
 0x13e   :  { %v411_v25 = vpop.f32.mrf.mxu1 }
 0x13f   :  { %v420_v36 = vadd.f32 %v411_v25, %v290_v31  ;;  %v2193_v25 = vld [vmem:[%s3409_s5 + $0x30] sm:$0xff] }
 0x140   :  { %v2661_v31 = vld [vmem:[%s3408_s4 + $0xd0] sm:$0xff] }
 0x144   :  { %v460_v7 = vpop.f32.mrf.mxu2 }
 0x145   :  { %v469_v8 = vpack.c.bf16 %v460_v7, %v457_v6  ;;  %v2657_v6 = vld [vmem:[%s3408_s4 + $0xb0] sm:$0xff]  ;;  %v2636_v7 = vld [vmem:[%s3408_s4 + $0x8] sm:$0xff] }
 0x146   :  { %v414_v28 = vpop.f32.mrf.mxu1  ;;  %784 = vmatpush.bf16.msra.mxu3 %v2636_v7  ;;  %v2670_v7 = vld [vmem:[%s3411_s7 + $0x18] sm:$0xff] }
 0x147   :  { %2053 = vmatmul.msk.bf16.vlgmr.msrb.gmra.mxu3 %vm210_vm1, %v469_v8  ;;  %v421_v32 = vadd.f32 %v414_v28, %v293_v30  ;;  %v2656_v8 = vld [vmem:[%s3408_s4 + $0xa8] sm:$0xff]  ;;  %v2662_v30 = vld [vmem:[%s3408_s4 + $0xd8] sm:$0xff] }
 0x148   :  { %v2664_v28 = vld [vmem:[%s3408_s4 + $0xe8] sm:$0xff] }
 0x14c   :  { %v463_v9 = vpop.f32.mrf.mxu2 }
 0x14e   :  { %v416_v33 = vpop.f32.mrf.mxu1 }
 0x14f   :  { %v422_v39 = vadd.f32 %v416_v33, %v295_v35  ;;  %v2659_v33 = vld [vmem:[%s3408_s4 + $0xc0] sm:$0xff] }
 0x154   :  { %v466_v10 = vpop.f32.mrf.mxu2 }
 0x155   :  { %v470_v11 = vpack.c.bf16 %v466_v10, %v463_v9  ;;  %v2635_v9 = vld [vmem:[%s3408_s4] sm:$0xff] }
 0x156   :  { %v2655_v10 = vld [vmem:[%s3408_s4 + $0xa0] sm:$0xff]  ;;  %785 = vmatpush.bf16.msra.mxu3 %v2635_v9  ;;  %v2669_v9 = vld [vmem:[%s3411_s7 + $0x10] sm:$0xff] }
 0x157   :  { %2054 = vmatmul.msk.bf16.gmra.mxu3 %vm210_vm1, %v470_v11  ;;  %v2654_v11 = vld [vmem:[%s3408_s4 + $0x98] sm:$0xff] }
 0x15a   :  { %1004 = vmatpush.bf16.msrb.mxu3 %v2666_v17  ;;  %v2667_v17 = vld [vmem:[%s3411_s7] sm:$0xff] }
 0x1ca   :  { %v535_v26 = vpop.f32.mrf.mxu3 }
 0x1cb   :  { %v545_v43 = vadd.f32 %v535_v26, %v419_v38  ;;  %v2194_v26 = vld [vmem:[%s3409_s5 + $0x38] sm:$0xff] }
 0x1cd   :  { %v553_v48 = vadd.f32 %v2739_v40, %v545_v43 }
 0x1cf   :  { %v561_v54 = vmul.f32 0.2, %v553_v48  ;;  %vm557_vm5 = vcmp.gt.f32.partialorder %v553_v48, 0.0 }
 0x1d1   :  { %v565_v59 = vsel %vm557_vm5, %v553_v48, %v561_v54  ;;  %v2674_v54 = vld [vmem:[%s3411_s7 + $0x38] sm:$0xff] }
 0x1d2   :  { %v537_v27 = vpop.f32.mrf.mxu3 }
 0x1d3   :  { %v546_v41 = vadd.f32 %v537_v27, %v420_v36  ;;  %v2665_v27 = vld [vmem:[%s3408_s4 + $0xf0] sm:$0xff] }
 0x1d4   :  { %1005 = vmatpush.bf16.msrb.mxu3 %v2665_v27  ;;  %v2693_v27 = vld [vmem:[%s3411_s7 + $0xd0] sm:$0xff] }
 0x1d5   :  { %v554_v46 = vadd.f32 %v2739_v40, %v546_v41 }
 0x1d7   :  { %v562_v51 = vmul.f32 0.2, %v554_v46  ;;  %vm558_vm4 = vcmp.gt.f32.partialorder %v554_v46, 0.0 }
 0x1d8   :  { %1006 = vmatpush.bf16.msrb.mxu3 %v2664_v28  ;;  %v2692_v28 = vld [vmem:[%s3411_s7 + $0xc8] sm:$0xff] }
 0x1d9   :  { %v566_v57 = vsel %vm558_vm4, %v554_v46, %v562_v51 }
 0x1da   :  { %v540_v29 = vpop.f32.mrf.mxu3 }
 0x1db   :  { %v547_v37 = vadd.f32 %v540_v29, %v421_v32  ;;  %v2663_v29 = vld [vmem:[%s3408_s4 + $0xe0] sm:$0xff]  ;;  %v2660_v32 = vld [vmem:[%s3408_s4 + $0xc8] sm:$0xff] }
 0x1dc   :  { %1007 = vmatpush.bf16.msrb.mxu3 %v2663_v29  ;;  %v2691_v29 = vld [vmem:[%s3411_s7 + $0xc0] sm:$0xff] }
 0x1dd   :  { %v555_v44 = vadd.f32 %v2739_v40, %v547_v37 }
 0x1df   :  { %v563_v49 = vmul.f32 0.2, %v555_v44  ;;  %vm559_vm3 = vcmp.gt.f32.partialorder %v555_v44, 0.0 }
 0x1e0   :  { %1008 = vmatpush.bf16.msrb.mxu3 %v2662_v30 }
 0x1e1   :  { %v567_v55 = vsel %vm559_vm3, %v555_v44, %v563_v49 }
 0x1e2   :  { %v542_v42 = vpop.f32.mrf.mxu3 }
 0x1e3   :  { %v548_v45 = vadd.f32 %v542_v42, %v422_v39 }
 0x1e4   :  { %1009 = vmatpush.bf16.msrb.mxu3 %v2661_v31 }
 0x1e5   :  { %v556_v47 = vadd.f32 %v2739_v40, %v548_v45 }
 0x1e7   :  { %v564_v50 = vmul.f32 0.2, %v556_v47  ;;  %vm560_vm2 = vcmp.gt.f32.partialorder %v556_v47, 0.0 }
 0x1e8   :  { %1010 = vmatpush.bf16.msrb.mxu3 %v2660_v32 }
 0x1e9   :  { %v568_v52 = vsel %vm560_vm2, %v556_v47, %v564_v50  ;;  %v2740_v47 = vld [vmem:[%s3410_s6] ss:$0 sm:$0xff] }
 0x1ea   :  { %590 = vmatpush.msra.mxu0 %v568_v52  ;;  %639 = vmatpush.msra.mxu1 %v568_v52 }
 0x1eb   :  { %927 = vmatpush.msra.mxu2 %v568_v52 }
 0x1ec   :  { %591 = vmatpush.msra.mxu0 %v567_v55  ;;  %640 = vmatpush.msra.mxu1 %v567_v55 }
 0x1ed   :  { %928 = vmatpush.msra.mxu2 %v567_v55  ;;  %1011 = vmatpush.bf16.msrb.mxu3 %v2659_v33 }
 0x1ee   :  { %592 = vmatpush.msra.mxu0 %v566_v57  ;;  %641 = vmatpush.msra.mxu1 %v566_v57 }
 0x1ef   :  { %929 = vmatpush.msra.mxu2 %v566_v57 }
 0x1f0   :  { %593 = vmatpush.msra.mxu0 %v565_v59  ;;  %642 = vmatpush.msra.mxu1 %v565_v59 }
 0x1f1   :  { %930 = vmatpush.msra.mxu2 %v565_v59  ;;  %2055 = vmatmul.msk.f32.vlgmr.msra.gmra.mxu0 %vm571_vm6, %v569_v58  ;;  %v2673_v58 = vld [vmem:[%s3411_s7 + $0x30] sm:$0xff] }
 0x1f2   :  { %2059 = vmatmul.msk.f32.vlgmr.msra.gmra.mxu1 %vm571_vm6, %v2057_v60  ;;  %813 = vmatpush.msrb.mxu0 %v568_v52  ;;  %v2690_v60 = vld [vmem:[%s3411_s7 + $0xb8] sm:$0xff] }
 0x1f3   :  { %890 = vmatpush.bf16.msrb.mxu1 %v2658_v62  ;;  %v2689_v62 = vld [vmem:[%s3411_s7 + $0xb0] sm:$0xff] }
 0x1f4   :  { %814 = vmatpush.msrb.mxu0 %v567_v55  ;;  %v2682_v55 = vld [vmem:[%s3411_s7 + $0x78] sm:$0xff] }
 0x1f6   :  { %815 = vmatpush.msrb.mxu0 %v566_v57 }
 0x1f7   :  { %891 = vmatpush.bf16.msrb.mxu1 %v2657_v6  ;;  %v2246_v6 = vld [vmem:[%s3412_s8 + $0x8] sm:$0xff] }
 0x1f8   :  { %816 = vmatpush.msrb.mxu0 %v565_v59  ;;  %v2681_v59 = vld [vmem:[%s3411_s7 + $0x70] sm:$0xff] }
 0x1f9   :  { %2056 = vmatmul.msk.f32.gmra.mxu0 %vm571_vm6, %v570_v0 }
 0x1fa   :  { %2060 = vmatmul.msk.f32.gmra.mxu1 %vm571_vm6, %v2058_v1  ;;  %v2672_v1 = vld [vmem:[%s3411_s7 + $0x28] sm:$0xff] }
 0x1fb   :  { %892 = vmatpush.bf16.msrb.mxu1 %v2656_v8  ;;  %v2678_v8 = vld [vmem:[%s3411_s7 + $0x58] sm:$0xff] }
 0x1ff   :  { %893 = vmatpush.bf16.msrb.mxu1 %v2655_v10  ;;  %v2328_v10 = vld [vmem:[%s3412_s8 + $0x10] sm:$0xff] }
 0x201   :  { %2143 = vmatmul.msk.f32.vlgmr.msrb.gmra.mxu0 %vm571_vm6, %v2141_v3  ;;  %v2688_v3 = vld [vmem:[%s3411_s7 + $0xa8] sm:$0xff] }
 0x203   :  { %894 = vmatpush.bf16.msrb.mxu1 %v2654_v11  ;;  %v2698_v11 = vld [vmem:[%s3411_s7 + $0xf8] sm:$0xff] }
 0x207   :  { %895 = vmatpush.bf16.msrb.mxu1 %v2653_v12  ;;  %v2668_v12 = vld [vmem:[%s3411_s7 + $0x8] sm:$0xff] }
 0x209   :  { %2144 = vmatmul.msk.f32.gmra.mxu0 %vm571_vm6, %v2142_v4  ;;  %v2671_v4 = vld [vmem:[%s3411_s7 + $0x20] sm:$0xff] }
 0x20b   :  { %896 = vmatpush.bf16.msrb.mxu1 %v2652_v13  ;;  %v2378_v13 = vld [vmem:[%s3412_s8 + $0x18] sm:$0xff] }
 0x20f   :  { %897 = vmatpush.bf16.msrb.mxu1 %v2651_v14  ;;  %v2677_v14 = vld [vmem:[%s3411_s7 + $0x50] sm:$0xff] }
 0x213   :  { %1226 = vmatpush.bf16.msra.mxu1 %v2674_v54 }
 0x217   :  { %1227 = vmatpush.bf16.msra.mxu1 %v2673_v58  ;;  %v2714_v58 = vld [vmem:[%s3414_s10 + $0x78] sm:$0xff] }
 0x21b   :  { %1228 = vmatpush.bf16.msra.mxu1 %v2672_v1  ;;  %v2702_v1 = vld [vmem:[%s3414_s10 + $0x18] sm:$0xff] }
 0x21f   :  { %1229 = vmatpush.bf16.msra.mxu1 %v2671_v4  ;;  %v2511_v4 = vld [vmem:[%s3415_s11 + $0x8] sm:$0xf] }
 0x223   :  { %1230 = vmatpush.bf16.msra.mxu1 %v2670_v7  ;;  %v2711_v7 = vld [vmem:[%s3414_s10 + $0x60] sm:$0xff] }
 0x227   :  { %1231 = vmatpush.bf16.msra.mxu1 %v2669_v9  ;;  %v2710_v9 = vld [vmem:[%s3414_s10 + $0x58] sm:$0xff] }
 0x22b   :  { %1232 = vmatpush.bf16.msra.mxu1 %v2668_v12  ;;  %v2709_v12 = vld [vmem:[%s3414_s10 + $0x50] sm:$0xff] }
 0x22f   :  { %1233 = vmatpush.bf16.msra.mxu1 %v2667_v17  ;;  %v2700_v17 = vld [vmem:[%s3414_s10 + $0x8] sm:$0xff] }
 0x26e   :  { %v595_v15 = vpop.f32.mrf.mxu0 }
 0x26f   :  { %v644_v16 = vpop.f32.mrf.mxu1 }
 0x276   :  { %v598_v18 = vpop.f32.mrf.mxu0 }
 0x277   :  { %v601_v19 = vpack.c.bf16 %v598_v18, %v595_v15  ;;  %v647_v20 = vpop.f32.mrf.mxu1  ;;  %v2687_v15 = vld [vmem:[%s3411_s7 + $0xa0] sm:$0xff]  ;;  %v2676_v18 = vld [vmem:[%s3411_s7 + $0x48] sm:$0xff] }
 0x278   :  { %v650_v21 = vpack.c.bf16 %v647_v20, %v644_v16  ;;  %v2697_v16 = vld [vmem:[%s3411_s7 + $0xf0] sm:$0xff]  ;;  %v2696_v20 = vld [vmem:[%s3411_s7 + $0xe8] sm:$0xff] }
 0x279   :  { %786 = vmatmul.bf16.vlgmr.msra.gmra.mxu3 %v601_v19  ;;  %v2686_v19 = vld [vmem:[%s3411_s7 + $0x98] sm:$0xff] }
 0x27a   :  { %724 = vmatmul.bf16.vlgmr.msrb.gmra.mxu2 %v650_v21  ;;  %1330 = vmatpush.bf16.msra.mxu3 %v2690_v60  ;;  %v2675_v21 = vld [vmem:[%s3411_s7 + $0x40] sm:$0xff] }
 0x27b   :  { %1165 = vmatpush.bf16.msrb.mxu2 %v2682_v55  ;;  %v2429_v60 = vld [vmem:[%s3415_s11 + $0x4] sm:$0xf] }
 0x27e   :  { %v818_v22 = vpop.f32.mrf.mxu0  ;;  %1331 = vmatpush.bf16.msra.mxu3 %v2689_v62 }
 0x27f   :  { %1166 = vmatpush.bf16.msrb.mxu2 %v2681_v59 }
 0x282   :  { %1332 = vmatpush.bf16.msra.mxu3 %v2688_v3  ;;  %v2712_v3 = vld [vmem:[%s3414_s10 + $0x68] sm:$0xff] }
 0x283   :  { %1167 = vmatpush.bf16.msrb.mxu2 %v2680_v2  ;;  %v2718_v2 = vld [vmem:[%s3414_s10 + $0x98] sm:$0xff] }
 0x286   :  { %v821_v23 = vpop.f32.mrf.mxu0  ;;  %1333 = vmatpush.bf16.msra.mxu3 %v2687_v15  ;;  %v2717_v15 = vld [vmem:[%s3414_s10 + $0x90] sm:$0xff] }
 0x287   :  { %v824_v24 = vpack.c.bf16 %v821_v23, %v818_v22  ;;  %1168 = vmatpush.bf16.msrb.mxu2 %v2679_v5  ;;  %v2685_v22 = vld [vmem:[%s3411_s7 + $0x90] sm:$0xff]  ;;  %v2695_v23 = vld [vmem:[%s3411_s7 + $0xe0] sm:$0xff]  ;;  %v2730_v5 = vld [vmem:[%s3414_s10 + $0xf8] sm:$0xff] }
 0x289   :  { %898 = vmatmul.bf16.vlgmr.msrb.gmra.mxu1 %v824_v24  ;;  %v2684_v24 = vld [vmem:[%s3411_s7 + $0x88] sm:$0xff] }
 0x28a   :  { %2195 = vmatmul.msk.f32.vlgmr.msra.gmra.mxu2 %vm571_vm6, %v2193_v25  ;;  %1334 = vmatpush.bf16.msra.mxu3 %v2686_v19  ;;  %v2694_v25 = vld [vmem:[%s3411_s7 + $0xd8] sm:$0xff] }
 0x28b   :  { %1169 = vmatpush.bf16.msrb.mxu2 %v2678_v8  ;;  %v2729_v8 = vld [vmem:[%s3414_s10 + $0xf0] sm:$0xff]  ;;  %v2726_v19 = vld [vmem:[%s3414_s10 + $0xd8] sm:$0xff] }
 0x28e   :  { %1335 = vmatpush.bf16.msra.mxu3 %v2685_v22  ;;  %v2725_v22 = vld [vmem:[%s3414_s10 + $0xd0] sm:$0xff] }
 0x28f   :  { %1170 = vmatpush.bf16.msrb.mxu2 %v2677_v14  ;;  %v2707_v14 = vld [vmem:[%s3414_s10 + $0x40] sm:$0xff] }
 0x292   :  { %2196 = vmatmul.msk.f32.gmra.mxu2 %vm571_vm6, %v2194_v26  ;;  %1336 = vmatpush.bf16.msra.mxu3 %v2684_v24  ;;  %v2683_v26 = vld [vmem:[%s3411_s7 + $0x80] sm:$0xff] }
 0x293   :  { %1171 = vmatpush.bf16.msrb.mxu2 %v2676_v18  ;;  %v2716_v18 = vld [vmem:[%s3414_s10 + $0x88] sm:$0xff]  ;;  %v2723_v24 = vld [vmem:[%s3414_s10 + $0xc0] sm:$0xff] }
 0x296   :  { %1337 = vmatpush.bf16.msra.mxu3 %v2683_v26 }
 0x297   :  { %1172 = vmatpush.bf16.msrb.mxu2 %v2675_v21  ;;  %v2715_v21 = vld [vmem:[%s3414_s10 + $0x80] sm:$0xff] }
 0x2fc   :  { %v787_v39 = vpop.f32.mrf.mxu3 }
 0x2fd   :  { %v725_v34 = vpop.f32.mrf.mxu2 }
 0x2fe   :  { %v788_v42 = vadd.f32 %v787_v39, %v725_v34 }
 0x304   :  { %v789_v40 = vpop.f32.mrf.mxu3 }
 0x305   :  { %v727_v35 = vpop.f32.mrf.mxu2 }
 0x306   :  { %v899_v41 = vpop.f32.mrf.mxu1  ;;  %v790_v48 = vadd.f32 %v789_v40, %v727_v35 }
 0x307   :  { %v904_v44 = vadd.f32 %v899_v41, %v788_v42  ;;  %v2706_v41 = vld [vmem:[%s3414_s10 + $0x38] sm:$0xff] }
 0x308   :  { %v2722_v42 = vld [vmem:[%s3414_s10 + $0xb8] sm:$0xff] }
 0x30d   :  { %v932_v36 = vpop.f32.mrf.mxu2 }
 0x30e   :  { %v901_v45 = vpop.f32.mrf.mxu1 }
 0x30f   :  { %v905_v49 = vadd.f32 %v901_v45, %v790_v48  ;;  %v2721_v45 = vld [vmem:[%s3414_s10 + $0xb0] sm:$0xff] }
 0x315   :  { %v935_v37 = vpop.f32.mrf.mxu2 }
 0x316   :  { %v938_v38 = vpack.c.bf16 %v935_v37, %v932_v36 }
 0x318   :  { %1012 = vmatmul.bf16.vlgmr.msrb.gmra.mxu3 %v938_v38 }
 0x319   :  { %1651 = vmatpush.bf16.msrb.mxu3 %v2706_v41 }
 0x39b   :  { %v1013_v43 = vpop.f32.mrf.mxu3 }
 0x39c   :  { %v1018_v46 = vadd.f32 %v1013_v43, %v904_v44  ;;  %v2705_v43 = vld [vmem:[%s3414_s10 + $0x30] sm:$0xff] }
 0x39d   :  { %1652 = vmatpush.bf16.msrb.mxu3 %v2705_v43 }
 0x39e   :  { %v1024_v50 = vadd.f32 %v2740_v47, %v1018_v46 }
 0x3a0   :  { %v1028_v56 = vmul.f32 0.2, %v1024_v50  ;;  %vm1026_vm8 = vcmp.gt.f32.partialorder %v1024_v50, 0.0 }
 0x3a2   :  { %v1030_v0 = vsel %vm1026_vm8, %v1024_v50, %v1028_v56 }
 0x3a3   :  { %v1015_v51 = vpop.f32.mrf.mxu3 }
 0x3a4   :  { %v1019_v52 = vadd.f32 %v1015_v51, %v905_v49  ;;  %v2741_v49 = vld [vmem:[%s3413_s9] ss:$0 sm:$0xff]  ;;  %v2704_v51 = vld [vmem:[%s3414_s10 + $0x28] sm:$0xff] }
 0x3a5   :  { %1653 = vmatpush.bf16.msrb.mxu3 %v2704_v51 }
 0x3a6   :  { %v1025_v53 = vadd.f32 %v2740_v47, %v1019_v52 }
 0x3a8   :  { %v1029_v57 = vmul.f32 0.2, %v1025_v53  ;;  %vm1027_vm7 = vcmp.gt.f32.partialorder %v1025_v53, 0.0 }
 0x3aa   :  { %v1031_v61 = vsel %vm1027_vm7, %v1025_v53, %v1029_v57  ;;  %v2720_v53 = vld [vmem:[%s3414_s10 + $0xa8] sm:$0xff]  ;;  %v1457_v57 = vld [vmem:[%s3415_s11] sm:$0xf] }
 0x3ab   :  { %1051 = vmatpush.msra.mxu0 %v1031_v61 }
 0x3ad   :  { %1052 = vmatpush.msra.mxu0 %v1030_v0 }
 0x3ae   :  { %2245 = vmatmul.msk.f32.vlgmr.msra.gmra.mxu0 %vm1033_vm9, %v1032_v63  ;;  %v2719_v63 = vld [vmem:[%s3414_s10 + $0xa0] sm:$0xff] }
 0x3af   :  { %1093 = vmatpush.msrb.mxu0 %v1031_v61 }
 0x3b1   :  { %1094 = vmatpush.msrb.mxu0 %v1030_v0 }
 0x3b3   :  { %1258 = vmatpush.msra.mxu0 %v1031_v61 }
 0x3b5   :  { %1259 = vmatpush.msra.mxu0 %v1030_v0 }
 0x3b6   :  { %2247 = vmatmul.msk.f32.vlgmr.msrb.gmra.mxu0 %vm1033_vm9, %v2246_v6  ;;  %v2701_v6 = vld [vmem:[%s3414_s10 + $0x10] sm:$0xff] }
 0x3b7   :  { %1363 = vmatpush.msrb.mxu0 %v1031_v61  ;;  %v2703_v61 = vld [vmem:[%s3414_s10 + $0x20] sm:$0xff] }
 0x3b8   :  { %1654 = vmatpush.bf16.msrb.mxu3 %v2703_v61 }
 0x3b9   :  { %1364 = vmatpush.msrb.mxu0 %v1030_v0  ;;  %v2713_v0 = vld [vmem:[%s3414_s10 + $0x70] sm:$0xff] }
 0x3bc   :  { %1655 = vmatpush.bf16.msrb.mxu3 %v2702_v1 }
 0x3be   :  { %2329 = vmatmul.msk.f32.vlgmr.msra.gmra.mxu0 %vm1033_vm9, %v2328_v10  ;;  %v2561_v10 = vld [vmem:[%s3415_s11 + $0xc] sm:$0xf] }
 0x3bf   :  { %1435 = vmatpush.bf16.msra.mxu0 %v2698_v11  ;;  %v2728_v11 = vld [vmem:[%s3414_s10 + $0xe8] sm:$0xff] }
 0x3c0   :  { %1656 = vmatpush.bf16.msrb.mxu3 %v2701_v6 }
 0x3c3   :  { %1436 = vmatpush.bf16.msra.mxu0 %v2697_v16  ;;  %v2727_v16 = vld [vmem:[%s3414_s10 + $0xe0] sm:$0xff] }
 0x3c4   :  { %1657 = vmatpush.bf16.msrb.mxu3 %v2700_v17 }
 0x3c6   :  { %2379 = vmatmul.msk.f32.vlgmr.msrb.gmra.mxu0 %vm1033_vm9, %v2378_v13  ;;  %v2708_v13 = vld [vmem:[%s3414_s10 + $0x48] sm:$0xff] }
 0x3c7   :  { %1437 = vmatpush.bf16.msra.mxu0 %v2696_v20  ;;  %v2699_v20 = vld [vmem:[%s3414_s10] sm:$0xff] }
 0x3c8   :  { %1658 = vmatpush.bf16.msrb.mxu3 %v2699_v20 }
 0x3cb   :  { %1438 = vmatpush.bf16.msra.mxu0 %v2695_v23  ;;  %v2724_v23 = vld [vmem:[%s3414_s10 + $0xc8] sm:$0xff] }
 0x3cf   :  { %1439 = vmatpush.bf16.msra.mxu0 %v2694_v25 }
 0x3d3   :  { %1440 = vmatpush.bf16.msra.mxu0 %v2693_v27 }
 0x3d7   :  { %1441 = vmatpush.bf16.msra.mxu0 %v2692_v28 }
 0x3db   :  { %1442 = vmatpush.bf16.msra.mxu0 %v2691_v29 }
 0x3df   :  { %1755 = vmatpush.bf16.msrb.mxu0 %v2722_v42 }
 0x3e3   :  { %1756 = vmatpush.bf16.msrb.mxu0 %v2721_v45 }
 0x3e7   :  { %1757 = vmatpush.bf16.msrb.mxu0 %v2720_v53 }
 0x3eb   :  { %1758 = vmatpush.bf16.msrb.mxu0 %v2719_v63 }
 0x3ef   :  { %1759 = vmatpush.bf16.msrb.mxu0 %v2718_v2 }
 0x3f3   :  { %1760 = vmatpush.bf16.msrb.mxu0 %v2717_v15 }
 0x3f7   :  { %1761 = vmatpush.bf16.msrb.mxu0 %v2716_v18 }
 0x3fb   :  { %1762 = vmatpush.bf16.msrb.mxu0 %v2715_v21 }
 0x42b   :  { %v1054_v30 = vpop.f32.mrf.mxu0 }
 0x42c   :  { %v1057_v31 = vpack.c.bf16 %v1054_v30, %v1054_v30 }
 0x42e   :  { %1234 = vmatmul.bf16.vlgmr.msra.gmra.mxu1 %v1057_v31 }
 0x433   :  { %v1096_v32 = vpop.f32.mrf.mxu0 }
 0x434   :  { %v1099_v33 = vpack.c.bf16 %v1096_v32, %v1096_v32 }
 0x436   :  { %1173 = vmatmul.bf16.vlgmr.msrb.gmra.mxu2 %v1099_v33 }
 0x43b   :  { %v1261_v34 = vpop.f32.mrf.mxu0 }
 0x43c   :  { %v1264_v35 = vpack.c.bf16 %v1261_v34, %v1261_v34 }
 0x43e   :  { %1338 = vmatmul.bf16.vlgmr.msra.gmra.mxu3 %v1264_v35 }
 0x443   :  { %v1366_v36 = vpop.f32.mrf.mxu0 }
 0x444   :  { %v1369_v37 = vpack.c.bf16 %v1366_v36, %v1366_v36 }
 0x446   :  { %1443 = vmatmul.bf16.vlgmr.msra.gmra.mxu0 %v1369_v37 }
 0x4ab   :  { %v1235_v38 = vpop.f32.mrf.mxu1 }
 0x4b3   :  { %v1237_v39 = vpop.f32.mrf.mxu1 }
 0x4b4   :  { %v2742_v39 = vld [vmem:[%s3416_s12] ss:$0 sm:$0xff] }
 0x4b9   :  { %v1174_v40 = vpop.f32.mrf.mxu2 }
 0x4ba   :  { %v1236_v44 = vadd.f32 %v1235_v38, %v1174_v40 }
 0x4c1   :  { %v1339_v46 = vpop.f32.mrf.mxu3  ;;  %v1176_v47 = vpop.f32.mrf.mxu2 }
 0x4c2   :  { %v1343_v48 = vadd.f32 %v1339_v46, %v1236_v44 }
 0x4c3   :  { %v1444_v50 = vpop.f32.mrf.mxu0 }
 0x4c4   :  { %v1448_v52 = vadd.f32 %v1444_v50, %v1343_v48 }
 0x4c6   :  { %v1453_v54 = vadd.f32 %v2741_v49, %v1448_v52 }
 0x4c8   :  { %v1455_v55 = vmul.f32 0.2, %v1453_v54  ;;  %vm1454_vm10 = vcmp.gt.f32.partialorder %v1453_v54, 0.0 }
 0x4c9   :  { %v1341_v56 = vpop.f32.mrf.mxu3 }
 0x4ca   :  { %v1456_v59 = vsel %vm1454_vm10, %v1453_v54, %v1455_v55 }
 0x4cb   :  { %1477 = vmatpush.msra.mxu2 %v1456_v59  ;;  %1519 = vmatpush.msrb.mxu1 %v1456_v59  ;;  %v1446_v62 = vpop.f32.mrf.mxu0 }
 0x4cc   :  { %2428 = vmatmul.msk.f32.vlgmr.msra.gmra.mxu2 %vm1458_vm11, %v1457_v57  ;;  %2430 = vmatmul.msk.f32.vlgmr.msrb.gmra.mxu1 %vm1458_vm11, %v2429_v60 }
 0x4cd   :  { %1684 = vmatpush.msra.mxu1 %v1456_v59  ;;  %1590 = vmatpush.bf16.msrb.mxu2 %v2714_v58 }
 0x4cf   :  { %1789 = vmatpush.msrb.mxu1 %v1456_v59 }
 0x4d1   :  { %1591 = vmatpush.bf16.msrb.mxu2 %v2713_v0 }
 0x4d4   :  { %2512 = vmatmul.msk.f32.vlgmr.msra.gmra.mxu1 %vm1458_vm11, %v2511_v4 }
 0x4d5   :  { %1592 = vmatpush.bf16.msrb.mxu2 %v2712_v3  ;;  %1860 = vmatpush.bf16.msra.mxu1 %v2730_v5 }
 0x4d9   :  { %1593 = vmatpush.bf16.msrb.mxu2 %v2711_v7  ;;  %1861 = vmatpush.bf16.msra.mxu1 %v2729_v8 }
 0x4dc   :  { %2562 = vmatmul.msk.f32.vlgmr.msrb.gmra.mxu1 %vm1458_vm11, %v2561_v10 }
 0x4dd   :  { %1594 = vmatpush.bf16.msrb.mxu2 %v2710_v9  ;;  %1862 = vmatpush.bf16.msra.mxu1 %v2728_v11 }
 0x4e1   :  { %1595 = vmatpush.bf16.msrb.mxu2 %v2709_v12  ;;  %1863 = vmatpush.bf16.msra.mxu1 %v2727_v16 }
 0x4e5   :  { %1596 = vmatpush.bf16.msrb.mxu2 %v2708_v13  ;;  %1864 = vmatpush.bf16.msra.mxu1 %v2726_v19 }
 0x4e9   :  { %1597 = vmatpush.bf16.msrb.mxu2 %v2707_v14  ;;  %1865 = vmatpush.bf16.msra.mxu1 %v2725_v22 }
 0x4ed   :  { %1866 = vmatpush.bf16.msra.mxu1 %v2724_v23 }
 0x4f1   :  { %1867 = vmatpush.bf16.msra.mxu1 %v2723_v24 }
 0x549   :  { %v1521_v25 = vpop.f32.mrf.mxu1 }
 0x54a   :  { %v1524_v26 = vpack.c.bf16 %v1521_v25, %v1521_v25 }
 0x54c   :  { %1598 = vmatmul.bf16.vlgmr.msrb.gmra.mxu2 %v1524_v26 }
 0x54f   :  { %v1479_v27 = vpop.f32.mrf.mxu2 }
 0x550   :  { %v1482_v28 = vpack.c.bf16 %v1479_v27, %v1479_v27 }
 0x551   :  { %v1686_v29 = vpop.f32.mrf.mxu1 }
 0x552   :  { %1659 = vmatmul.bf16.vlgmr.msrb.gmra.mxu3 %v1482_v28  ;;  %v1689_v30 = vpack.c.bf16 %v1686_v29, %v1686_v29 }
 0x554   :  { %1763 = vmatmul.bf16.vlgmr.msrb.gmra.mxu0 %v1689_v30 }
 0x559   :  { %v1791_v31 = vpop.f32.mrf.mxu1 }
 0x55a   :  { %v1794_v32 = vpack.c.bf16 %v1791_v31, %v1791_v31 }
 0x55c   :  { %1868 = vmatmul.bf16.vlgmr.msra.gmra.mxu1 %v1794_v32 }
 0x5cf   :  { %v1599_v33 = vpop.f32.mrf.mxu2 }
 0x5d1   :  { %v1764_v34 = vpop.f32.mrf.mxu0 }
 0x5d5   :  { %v1660_v35 = vpop.f32.mrf.mxu3 }
 0x5d6   :  { %v1661_v36 = vadd.f32 %v1660_v35, %v1599_v33 }
 0x5d7   :  { %v1601_v37 = vpop.f32.mrf.mxu2 }
 0x5d8   :  { %v1768_v38 = vadd.f32 %v1764_v34, %v1661_v36 }
 0x5d9   :  { %v1766_v40 = vpop.f32.mrf.mxu0  ;;  %v1869_v41 = vpop.f32.mrf.mxu1 }
 0x5da   :  { %v1873_v42 = vadd.f32 %v1869_v41, %v1768_v38 }
 0x5dc   :  { %v1878_v43 = vadd.f32 %v2742_v39, %v1873_v42 }
 0x5dd   :  { %v1662_v44 = vpop.f32.mrf.mxu3 }
 0x5de   :  { %vm1879_vm12 = vcmp.gt.f32.partialorder %v1878_v43, 0.0  ;;  %v1880_v45 = vmul.f32 0.2, %v1878_v43 }
 0x5e0   :  { %v1881_v46 = vsel %vm1879_vm12, %v1878_v43, %v1880_v45 }
 0x5e1   :  { %1882 = vst [vmem:[%s3417_s13] sm:$0xf] %v1881_v46  ;;  %v1871_v47 = vpop.f32.mrf.mxu1 }

</bundles_post_ra>
